<compile_context>
chip_gen: v7x
topology: tpu7x:2x2x1
jax: 0.10.0
libtpu: 0.0.40
codegen_flags: <defaults>
</compile_context>

<pallas_src>
import functools
import math

import jax
import jax.numpy as jnp
import numpy as np
from jax.experimental import pallas as pl
from jax.experimental.pallas import tpu as pltpu

# ----------------------------- synthetic hyper-parameters -----------------------------
PRIOR_INPUT_RES = 16        # hp.prior_input_res
INPUT_NC = 3                # image channels fed to the encoder
NGF = 8                     # base number of encoder conv filters
NZ_MID_PRIOR = 32           # hp.nz_mid_prior (encoder output feature size / MLP mid size)
STATE_COND_SIZE = 8         # hp.state_cond_size
NZ_VAE = 10                 # hp.nz_vae -> output is 2*nz_vae
NUM_PRIOR_NET_LAYERS = 3    # hp.num_prior_net_layers
LEAKY_SLOPE = 0.2           # spirl LayerBuilder uses LeakyReLU(0.2)
BATCH = 2
CONV_K = 4                  # encoder convs: 4x4 kernel, stride 2, pad 1

# TODO(synk): spirl's LayerBuilder can insert batch-/group-norm blocks inside Encoder and
# Predictor; normalization layers are omitted here (pure conv/linear + LeakyReLU semantics).


# ------------------------------------ fused kernel -------------------------------------
def _fused_forward_kernel(*refs, n_conv, n_fc_rest, slope):
    """Whole-batch forward pass in a single grid step.

    refs = [x, states,
            G_0, b_0, ..., G_{n_conv-1}, b_{n_conv-1},          # convs as dense matrices
            Wfc0_feat, Wfc0_state, bfc0,                        # first MLP layer (split)
            Wfc_1, bfc_1, ..., Wfc_{n_fc_rest}, bfc_{n_fc_rest},
            out]
    Every ref is a 2-D f32 tile; the body is only GEMMs + bias adds + LeakyReLU.
    """
    x_ref, st_ref = refs[0], refs[1]
    idx = 2
    conv_refs = refs[idx:idx + 2 * n_conv]
    idx += 2 * n_conv
    w_feat_ref, w_state_ref, b0_ref = refs[idx:idx + 3]
    idx += 3
    fc_refs = refs[idx:idx + 2 * n_fc_rest]
    idx += 2 * n_fc_rest
    o_ref = refs[idx]

    # ---- encoder: each 4x4 / stride-2 / pad-1 conv is one lane-dense GEMM ----
    act = x_ref[...]                                             # (B, H*W*Cin)
    for li in range(n_conv):
        g = conv_refs[2 * li][...]                               # (H*W*Cin, Ho*Wo*Cout)
        b = conv_refs[2 * li + 1][...]                           # (1, Ho*Wo*Cout)
        act = jnp.dot(act, g, preferred_element_type=jnp.float32) + b
        act = jnp.maximum(act, slope * act)                      # LeakyReLU
    # `act` is now (B, nz_mid_prior): the 1x1 spatial grid flattened == RemoveSpatial.

    # ---- Predictor MLP; concat(feat, states) folded into split first-layer weights ----
    z = (jnp.dot(act, w_feat_ref[...], preferred_element_type=jnp.float32)
         + jnp.dot(st_ref[...], w_state_ref[...], preferred_element_type=jnp.float32)
         + b0_ref[...])
    for li in range(n_fc_rest):
        z = jnp.maximum(z, slope * z)                            # LeakyReLU between layers
        z = (jnp.dot(z, fc_refs[2 * li][...], preferred_element_type=jnp.float32)
             + fc_refs[2 * li + 1][...])
    o_ref[...] = z.astype(o_ref.dtype)                           # single (B, 2*nz_vae) store


# --------------------------- conv -> dense lowering (wrapper) ---------------------------
def _conv_as_dense(w_hwio, bias, h_in):
    """Express a KxK / stride-2 / pad-1 conv on a square (h_in, h_in) plane as a dense map.

    Returns (G, b_full) with G: (h_in*h_in*Cin, h_out*h_out*Cout) such that
        flatten_hwc(conv(x)) == flatten_hwc(x) @ G + b_full        (mathematically exact;
    taps that fall outside the kernel support / into the zero padding contribute zeros).
    """
    k = int(w_hwio.shape[0])
    cin, cout = int(w_hwio.shape[2]), int(w_hwio.shape[3])
    h_out = h_in // 2
    src = np.arange(h_in)
    dst = np.arange(h_out)
    tap = src[:, None] - 2 * dst[None, :] + 1            # kernel tap hit by (src, dst) pair
    valid = (tap >= 0) & (tap < k)
    tap = np.clip(tap, 0, k - 1)
    # g[h, w, ho, wo, ci, co] = w[kh, kw, ci, co] (zeroed where the tap is out of range)
    g = jnp.asarray(w_hwio)[tap[:, None, :, None], tap[None, :, None, :]]
    mask = (valid[:, None, :, None] & valid[None, :, None, :]).astype(np.float32)
    g = g * mask[:, :, :, :, None, None]
    g = jnp.transpose(g, (0, 1, 4, 2, 3, 5))             # (H, W, Cin, Ho, Wo, Cout)
    g = g.reshape(h_in * h_in * cin, h_out * h_out * cout).astype(jnp.float32)
    b_full = jnp.tile(jnp.asarray(bias, jnp.float32), h_out * h_out).reshape(1, -1)
    return g, b_full


def pack_params(params):
    """One-time (outside jit) prep: lower the conv stack to per-layer dense matrices and
    split the first MLP weight into feature / state halves (replaces the in-kernel concat)."""
    packed = {"conv": []}
    res = PRIOR_INPUT_RES
    for w, b in params["enc"]:
        packed["conv"].append(_conv_as_dense(w, b, res))
        res //= 2
    assert res == 1, "conv stack must reduce the spatial dims to 1x1"
    w0, b0 = params["fc"][0]
    packed["fc0"] = (w0[:NZ_MID_PRIOR].astype(jnp.float32),      # multiplies encoder features
                     w0[NZ_MID_PRIOR:].astype(jnp.float32),      # multiplies inputs.states
                     b0.reshape(1, -1).astype(jnp.float32))
    packed["fc"] = [(w.astype(jnp.float32), b.reshape(1, -1).astype(jnp.float32))
                    for w, b in params["fc"][1:]]
    return packed


# --------------------------------------- wrapper ----------------------------------------
def _nearest_resize_nhwc(x, res):
    """torch F.interpolate(mode='nearest') semantics (floor convention)."""
    _, H, W, _ = x.shape
    if (H, W) == (res, res):
        return x
    if H % res == 0 and W % res == 0:
        return x[:, :: H // res, :: W // res, :]          # exact match for integer factors
    ri = (jnp.arange(res) * H) // res
    ci = (jnp.arange(res) * W) // res
    return x[:, ri][:, :, ci]


def state_cond_image_skill_prior_net(packed, images_nchw, states):
    # ResizeSpatial (nearest) + NCHW -> NHWC -> flatten (h, w, c): cheap XLA layout prologue.
    x = jnp.transpose(images_nchw, (0, 2, 3, 1)).astype(jnp.float32)
    x = _nearest_resize_nhwc(x, PRIOR_INPUT_RES)
    B = x.shape[0]
    x = x.reshape(B, -1)                                  # (B, res*res*Cin)
    st = states.astype(jnp.float32)                       # (B, state_cond_size)

    conv = packed["conv"]
    w_feat, w_state, b0 = packed["fc0"]
    fc = packed["fc"]
    out_dim = fc[-1][0].shape[1]

    args = [x, st]
    for g, b in conv:
        args += [g, b]
    args += [w_feat, w_state, b0]
    for w, b in fc:
        args += [w, b]

    # Every operand is a full-array VMEM-resident block (one DMA each, single grid step).
    in_specs = [pl.BlockSpec(a.shape, lambda i: (0, 0)) for a in args]

    out = pl.pallas_call(
        functools.partial(_fused_forward_kernel, n_conv=len(conv), n_fc_rest=len(fc),
                          slope=LEAKY_SLOPE),
        out_shape=jax.ShapeDtypeStruct((B, out_dim), jnp.float32),
        grid_spec=pltpu.PrefetchScalarGridSpec(
            num_scalar_prefetch=0,
            grid=(1,),                                    # whole batch in one grid step
            in_specs=in_specs,
            out_specs=pl.BlockSpec((B, out_dim), lambda i: (0, 0))),
        compiler_params=pltpu.CompilerParams(dimension_semantics=("arbitrary",)),
    )(*args)
    return out


# --------------------------------------- params -----------------------------------------
def init_params(key):
    """Random parameters.  Conv weights are HWIO (kh, kw, cin, cout): real PyTorch Conv2d
    weights (cout, cin, kh, kw) map via .permute(2, 3, 1, 0); Linear weights (dout, din)
    map via transpose."""
    params = {"enc": [], "fc": []}
    # Encoder: conv pyramid 16 -> 8 -> 4 -> 2 -> 1, channels 3 -> ngf -> 2ngf -> 4ngf -> nz_mid
    chans = [INPUT_NC, NGF, 2 * NGF, 4 * NGF, NZ_MID_PRIOR]
    # Predictor: in = nz_mid_prior + state_cond_size, hidden = nz_mid_prior, out = 2*nz_vae
    fc_sizes = ([NZ_MID_PRIOR + STATE_COND_SIZE]
                + [NZ_MID_PRIOR] * NUM_PRIOR_NET_LAYERS
                + [2 * NZ_VAE])
    n_keys = (len(chans) - 1) * 2 + (len(fc_sizes) - 1) * 2
    keys = jax.random.split(key, n_keys)
    ki = 0
    for cin, cout in zip(chans[:-1], chans[1:]):
        fan_in = CONV_K * CONV_K * cin
        w = jax.random.normal(keys[ki], (CONV_K, CONV_K, cin, cout), jnp.float32) / math.sqrt(fan_in)
        b = jax.random.normal(keys[ki + 1], (cout,), jnp.float32) * 0.01
        params["enc"].append((w, b))
        ki += 2
    for din, dout in zip(fc_sizes[:-1], fc_sizes[1:]):
        w = jax.random.normal(keys[ki], (din, dout), jnp.float32) / math.sqrt(din)
        b = jax.random.normal(keys[ki + 1], (dout,), jnp.float32) * 0.01
        params["fc"].append((w, b))
        ki += 2
    return params


# --------------------------------------- main -------------------------------------------
if __name__ == "__main__":
    key = jax.random.PRNGKey(0)
    k_img, k_state, k_param = jax.random.split(key, 3)
    # inputs.images (NCHW, larger than prior_input_res so ResizeSpatial does work), inputs.states
    images = jax.random.normal(k_img, (BATCH, INPUT_NC, 32, 32), jnp.float32)
    states = jax.random.normal(k_state, (BATCH, STATE_COND_SIZE), jnp.float32)
    params = init_params(k_param)
    packed = pack_params(params)          # one-time conv->dense lowering + fc0 split

    fwd = jax.jit(state_cond_image_skill_prior_net)
    z = jax.block_until_ready(fwd(packed, images, states))
    assert z.shape == (BATCH, 2 * NZ_VAE), z.shape
    assert bool(jnp.all(jnp.isfinite(z)))
    print("KERNEL_OK")
</pallas_src>

<mosaic_0001>
module attributes {stable_mosaic.version = 11 : i64} {
  func.func @_fused_forward_kernel(%arg0: i32, %arg1: memref<2x768xf32, #tpu.memory_space<vmem>>, %arg2: memref<2x8xf32, #tpu.memory_space<vmem>>, %arg3: memref<768x512xf32, #tpu.memory_space<vmem>>, %arg4: memref<1x512xf32, #tpu.memory_space<vmem>>, %arg5: memref<512x256xf32, #tpu.memory_space<vmem>>, %arg6: memref<1x256xf32, #tpu.memory_space<vmem>>, %arg7: memref<256x128xf32, #tpu.memory_space<vmem>>, %arg8: memref<1x128xf32, #tpu.memory_space<vmem>>, %arg9: memref<128x32xf32, #tpu.memory_space<vmem>>, %arg10: memref<1x32xf32, #tpu.memory_space<vmem>>, %arg11: memref<32x32xf32, #tpu.memory_space<vmem>>, %arg12: memref<8x32xf32, #tpu.memory_space<vmem>>, %arg13: memref<1x32xf32, #tpu.memory_space<vmem>>, %arg14: memref<32x32xf32, #tpu.memory_space<vmem>>, %arg15: memref<1x32xf32, #tpu.memory_space<vmem>>, %arg16: memref<32x32xf32, #tpu.memory_space<vmem>>, %arg17: memref<1x32xf32, #tpu.memory_space<vmem>>, %arg18: memref<32x20xf32, #tpu.memory_space<vmem>>, %arg19: memref<1x20xf32, #tpu.memory_space<vmem>>, %arg20: memref<2x20xf32, #tpu.memory_space<vmem>>) attributes {dimension_semantics = [#tpu.dimension_semantics<arbitrary>], iteration_bounds = array<i64: 1>, scalar_prefetch = 0 : i64, scratch_operands = 0 : i64, tpu.core_type = #tpu.core_type<tc>, window_params = [{pipeline_mode = #tpu.pipeline_mode<synchronous>, transform_indices = @transform_0, window_bounds = array<i64: 2, 768>}, {pipeline_mode = #tpu.pipeline_mode<synchronous>, transform_indices = @transform_1, window_bounds = array<i64: 2, 8>}, {pipeline_mode = #tpu.pipeline_mode<synchronous>, transform_indices = @transform_2, window_bounds = array<i64: 768, 512>}, {pipeline_mode = #tpu.pipeline_mode<synchronous>, transform_indices = @transform_3, window_bounds = array<i64: 1, 512>}, {pipeline_mode = #tpu.pipeline_mode<synchronous>, transform_indices = @transform_4, window_bounds = array<i64: 512, 256>}, {pipeline_mode = #tpu.pipeline_mode<synchronous>, transform_indices = @transform_5, window_bounds = array<i64: 1, 256>}, {pipeline_mode = #tpu.pipeline_mode<synchronous>, transform_indices = @transform_6, window_bounds = array<i64: 256, 128>}, {pipeline_mode = #tpu.pipeline_mode<synchronous>, transform_indices = @transform_7, window_bounds = array<i64: 1, 128>}, {pipeline_mode = #tpu.pipeline_mode<synchronous>, transform_indices = @transform_8, window_bounds = array<i64: 128, 32>}, {pipeline_mode = #tpu.pipeline_mode<synchronous>, transform_indices = @transform_9, window_bounds = array<i64: 1, 32>}, {pipeline_mode = #tpu.pipeline_mode<synchronous>, transform_indices = @transform_10, window_bounds = array<i64: 32, 32>}, {pipeline_mode = #tpu.pipeline_mode<synchronous>, transform_indices = @transform_11, window_bounds = array<i64: 8, 32>}, {pipeline_mode = #tpu.pipeline_mode<synchronous>, transform_indices = @transform_12, window_bounds = array<i64: 1, 32>}, {pipeline_mode = #tpu.pipeline_mode<synchronous>, transform_indices = @transform_13, window_bounds = array<i64: 32, 32>}, {pipeline_mode = #tpu.pipeline_mode<synchronous>, transform_indices = @transform_14, window_bounds = array<i64: 1, 32>}, {pipeline_mode = #tpu.pipeline_mode<synchronous>, transform_indices = @transform_15, window_bounds = array<i64: 32, 32>}, {pipeline_mode = #tpu.pipeline_mode<synchronous>, transform_indices = @transform_16, window_bounds = array<i64: 1, 32>}, {pipeline_mode = #tpu.pipeline_mode<synchronous>, transform_indices = @transform_17, window_bounds = array<i64: 32, 20>}, {pipeline_mode = #tpu.pipeline_mode<synchronous>, transform_indices = @transform_18, window_bounds = array<i64: 1, 20>}, {pipeline_mode = #tpu.pipeline_mode<synchronous>, transform_indices = @transform_19, window_bounds = array<i64: 2, 20>}]} {
    %c0 = arith.constant 0 : index
    %c0_0 = arith.constant 0 : index
    %0 = vector.load %arg1[%c0, %c0_0] : memref<2x768xf32, #tpu.memory_space<vmem>>, vector<2x768xf32>
    %c0_1 = arith.constant 0 : index
    %c0_2 = arith.constant 0 : index
    %1 = vector.load %arg3[%c0_1, %c0_2] : memref<768x512xf32, #tpu.memory_space<vmem>>, vector<768x512xf32>
    %c0_3 = arith.constant 0 : index
    %c0_4 = arith.constant 0 : index
    %2 = vector.load %arg4[%c0_3, %c0_4] : memref<1x512xf32, #tpu.memory_space<vmem>>, vector<1x512xf32>
    %cst = arith.constant dense<0.000000e+00> : vector<2x512xf32>
    %3 = tpu.matmul %0, %1, %cst {dimension_numbers = #tpu.dot_dimension_numbers<[1], [0], [0], [1], [0, 0, 1, 1], [], []>} : vector<2x768xf32>, vector<768x512xf32>, vector<2x512xf32> -> vector<2x512xf32>
    %4 = vector.broadcast %2 : vector<1x512xf32> to vector<2x512xf32>
    %5 = arith.addf %3, %4 : vector<2x512xf32>
    %cst_5 = arith.constant 2.000000e-01 : f32
    %6 = vector.broadcast %cst_5 : f32 to vector<2x512xf32>
    %7 = arith.mulf %6, %5 : vector<2x512xf32>
    %8 = arith.maximumf %5, %7 : vector<2x512xf32>
    %c0_6 = arith.constant 0 : index
    %c0_7 = arith.constant 0 : index
    %9 = vector.load %arg5[%c0_6, %c0_7] : memref<512x256xf32, #tpu.memory_space<vmem>>, vector<512x256xf32>
    %c0_8 = arith.constant 0 : index
    %c0_9 = arith.constant 0 : index
    %10 = vector.load %arg6[%c0_8, %c0_9] : memref<1x256xf32, #tpu.memory_space<vmem>>, vector<1x256xf32>
    %cst_10 = arith.constant dense<0.000000e+00> : vector<2x256xf32>
    %11 = tpu.matmul %8, %9, %cst_10 {dimension_numbers = #tpu.dot_dimension_numbers<[1], [0], [0], [1], [0, 0, 1, 1], [], []>} : vector<2x512xf32>, vector<512x256xf32>, vector<2x256xf32> -> vector<2x256xf32>
    %12 = vector.broadcast %10 : vector<1x256xf32> to vector<2x256xf32>
    %13 = arith.addf %11, %12 : vector<2x256xf32>
    %cst_11 = arith.constant 2.000000e-01 : f32
    %14 = vector.broadcast %cst_11 : f32 to vector<2x256xf32>
    %15 = arith.mulf %14, %13 : vector<2x256xf32>
    %16 = arith.maximumf %13, %15 : vector<2x256xf32>
    %c0_12 = arith.constant 0 : index
    %c0_13 = arith.constant 0 : index
    %17 = vector.load %arg7[%c0_12, %c0_13] : memref<256x128xf32, #tpu.memory_space<vmem>>, vector<256x128xf32>
    %c0_14 = arith.constant 0 : index
    %c0_15 = arith.constant 0 : index
    %18 = vector.load %arg8[%c0_14, %c0_15] : memref<1x128xf32, #tpu.memory_space<vmem>>, vector<1x128xf32>
    %cst_16 = arith.constant dense<0.000000e+00> : vector<2x128xf32>
    %19 = tpu.matmul %16, %17, %cst_16 {dimension_numbers = #tpu.dot_dimension_numbers<[1], [0], [0], [1], [0, 0, 1, 1], [], []>} : vector<2x256xf32>, vector<256x128xf32>, vector<2x128xf32> -> vector<2x128xf32>
    %20 = vector.broadcast %18 : vector<1x128xf32> to vector<2x128xf32>
    %21 = arith.addf %19, %20 : vector<2x128xf32>
    %cst_17 = arith.constant 2.000000e-01 : f32
    %22 = vector.broadcast %cst_17 : f32 to vector<2x128xf32>
    %23 = arith.mulf %22, %21 : vector<2x128xf32>
    %24 = arith.maximumf %21, %23 : vector<2x128xf32>
    %c0_18 = arith.constant 0 : index
    %c0_19 = arith.constant 0 : index
    %25 = vector.load %arg9[%c0_18, %c0_19] : memref<128x32xf32, #tpu.memory_space<vmem>>, vector<128x32xf32>
    %c0_20 = arith.constant 0 : index
    %c0_21 = arith.constant 0 : index
    %26 = vector.load %arg10[%c0_20, %c0_21] : memref<1x32xf32, #tpu.memory_space<vmem>>, vector<1x32xf32>
    %cst_22 = arith.constant dense<0.000000e+00> : vector<2x32xf32>
    %27 = tpu.matmul %24, %25, %cst_22 {dimension_numbers = #tpu.dot_dimension_numbers<[1], [0], [0], [1], [0, 0, 1, 1], [], []>} : vector<2x128xf32>, vector<128x32xf32>, vector<2x32xf32> -> vector<2x32xf32>
    %28 = vector.broadcast %26 : vector<1x32xf32> to vector<2x32xf32>
    %29 = arith.addf %27, %28 : vector<2x32xf32>
    %cst_23 = arith.constant 2.000000e-01 : f32
    %30 = vector.broadcast %cst_23 : f32 to vector<2x32xf32>
    %31 = arith.mulf %30, %29 : vector<2x32xf32>
    %32 = arith.maximumf %29, %31 : vector<2x32xf32>
    %c0_24 = arith.constant 0 : index
    %c0_25 = arith.constant 0 : index
    %33 = vector.load %arg11[%c0_24, %c0_25] : memref<32x32xf32, #tpu.memory_space<vmem>>, vector<32x32xf32>
    %cst_26 = arith.constant dense<0.000000e+00> : vector<2x32xf32>
    %34 = tpu.matmul %32, %33, %cst_26 {dimension_numbers = #tpu.dot_dimension_numbers<[1], [0], [0], [1], [0, 0, 1, 1], [], []>} : vector<2x32xf32>, vector<32x32xf32>, vector<2x32xf32> -> vector<2x32xf32>
    %c0_27 = arith.constant 0 : index
    %c0_28 = arith.constant 0 : index
    %35 = vector.load %arg2[%c0_27, %c0_28] : memref<2x8xf32, #tpu.memory_space<vmem>>, vector<2x8xf32>
    %c0_29 = arith.constant 0 : index
    %c0_30 = arith.constant 0 : index
    %36 = vector.load %arg12[%c0_29, %c0_30] : memref<8x32xf32, #tpu.memory_space<vmem>>, vector<8x32xf32>
    %cst_31 = arith.constant dense<0.000000e+00> : vector<2x32xf32>
    %37 = tpu.matmul %35, %36, %cst_31 {dimension_numbers = #tpu.dot_dimension_numbers<[1], [0], [0], [1], [0, 0, 1, 1], [], []>} : vector<2x8xf32>, vector<8x32xf32>, vector<2x32xf32> -> vector<2x32xf32>
    %38 = arith.addf %34, %37 : vector<2x32xf32>
    %c0_32 = arith.constant 0 : index
    %c0_33 = arith.constant 0 : index
    %39 = vector.load %arg13[%c0_32, %c0_33] : memref<1x32xf32, #tpu.memory_space<vmem>>, vector<1x32xf32>
    %40 = vector.broadcast %39 : vector<1x32xf32> to vector<2x32xf32>
    %41 = arith.addf %38, %40 : vector<2x32xf32>
    %cst_34 = arith.constant 2.000000e-01 : f32
    %42 = vector.broadcast %cst_34 : f32 to vector<2x32xf32>
    %43 = arith.mulf %42, %41 : vector<2x32xf32>
    %44 = arith.maximumf %41, %43 : vector<2x32xf32>
    %c0_35 = arith.constant 0 : index
    %c0_36 = arith.constant 0 : index
    %45 = vector.load %arg14[%c0_35, %c0_36] : memref<32x32xf32, #tpu.memory_space<vmem>>, vector<32x32xf32>
    %cst_37 = arith.constant dense<0.000000e+00> : vector<2x32xf32>
    %46 = tpu.matmul %44, %45, %cst_37 {dimension_numbers = #tpu.dot_dimension_numbers<[1], [0], [0], [1], [0, 0, 1, 1], [], []>} : vector<2x32xf32>, vector<32x32xf32>, vector<2x32xf32> -> vector<2x32xf32>
    %c0_38 = arith.constant 0 : index
    %c0_39 = arith.constant 0 : index
    %47 = vector.load %arg15[%c0_38, %c0_39] : memref<1x32xf32, #tpu.memory_space<vmem>>, vector<1x32xf32>
    %48 = vector.broadcast %47 : vector<1x32xf32> to vector<2x32xf32>
    %49 = arith.addf %46, %48 : vector<2x32xf32>
    %cst_40 = arith.constant 2.000000e-01 : f32
    %50 = vector.broadcast %cst_40 : f32 to vector<2x32xf32>
    %51 = arith.mulf %50, %49 : vector<2x32xf32>
    %52 = arith.maximumf %49, %51 : vector<2x32xf32>
    %c0_41 = arith.constant 0 : index
    %c0_42 = arith.constant 0 : index
    %53 = vector.load %arg16[%c0_41, %c0_42] : memref<32x32xf32, #tpu.memory_space<vmem>>, vector<32x32xf32>
    %cst_43 = arith.constant dense<0.000000e+00> : vector<2x32xf32>
    %54 = tpu.matmul %52, %53, %cst_43 {dimension_numbers = #tpu.dot_dimension_numbers<[1], [0], [0], [1], [0, 0, 1, 1], [], []>} : vector<2x32xf32>, vector<32x32xf32>, vector<2x32xf32> -> vector<2x32xf32>
    %c0_44 = arith.constant 0 : index
    %c0_45 = arith.constant 0 : index
    %55 = vector.load %arg17[%c0_44, %c0_45] : memref<1x32xf32, #tpu.memory_space<vmem>>, vector<1x32xf32>
    %56 = vector.broadcast %55 : vector<1x32xf32> to vector<2x32xf32>
    %57 = arith.addf %54, %56 : vector<2x32xf32>
    %cst_46 = arith.constant 2.000000e-01 : f32
    %58 = vector.broadcast %cst_46 : f32 to vector<2x32xf32>
    %59 = arith.mulf %58, %57 : vector<2x32xf32>
    %60 = arith.maximumf %57, %59 : vector<2x32xf32>
    %c0_47 = arith.constant 0 : index
    %c0_48 = arith.constant 0 : index
    %61 = vector.load %arg18[%c0_47, %c0_48] : memref<32x20xf32, #tpu.memory_space<vmem>>, vector<32x20xf32>
    %cst_49 = arith.constant dense<0.000000e+00> : vector<2x20xf32>
    %62 = tpu.matmul %60, %61, %cst_49 {dimension_numbers = #tpu.dot_dimension_numbers<[1], [0], [0], [1], [0, 0, 1, 1], [], []>} : vector<2x32xf32>, vector<32x20xf32>, vector<2x20xf32> -> vector<2x20xf32>
    %c0_50 = arith.constant 0 : index
    %c0_51 = arith.constant 0 : index
    %63 = vector.load %arg19[%c0_50, %c0_51] : memref<1x20xf32, #tpu.memory_space<vmem>>, vector<1x20xf32>
    %64 = vector.broadcast %63 : vector<1x20xf32> to vector<2x20xf32>
    %65 = arith.addf %62, %64 : vector<2x20xf32>
    %c0_52 = arith.constant 0 : index
    %c0_53 = arith.constant 0 : index
    %66 = vector.load %arg20[%c0_52, %c0_53] : memref<2x20xf32, #tpu.memory_space<vmem>>, vector<2x20xf32>
    tpu.vector_store %arg20[%c0_52, %c0_53], %65 {strides = array<i32>} : memref<2x20xf32, #tpu.memory_space<vmem>>, vector<2x20xf32>,
    return
  }
  func.func @transform_0(%arg0: i32) -> (i32, i32) {
    %c0_i32 = arith.constant 0 : i32
    %c0_i32_0 = arith.constant 0 : i32
    %c0_i32_1 = arith.constant 0 : i32
    return %c0_i32, %c0_i32_0 : i32, i32
  }
  func.func @transform_1(%arg0: i32) -> (i32, i32) {
    %c0_i32 = arith.constant 0 : i32
    %c0_i32_0 = arith.constant 0 : i32
    %c0_i32_1 = arith.constant 0 : i32
    return %c0_i32, %c0_i32_0 : i32, i32
  }
  func.func @transform_2(%arg0: i32) -> (i32, i32) {
    %c0_i32 = arith.constant 0 : i32
    %c0_i32_0 = arith.constant 0 : i32
    %c0_i32_1 = arith.constant 0 : i32
    return %c0_i32, %c0_i32_0 : i32, i32
  }
  func.func @transform_3(%arg0: i32) -> (i32, i32) {
    %c0_i32 = arith.constant 0 : i32
    %c0_i32_0 = arith.constant 0 : i32
    %c0_i32_1 = arith.constant 0 : i32
    return %c0_i32, %c0_i32_0 : i32, i32
  }
  func.func @transform_4(%arg0: i32) -> (i32, i32) {
    %c0_i32 = arith.constant 0 : i32
    %c0_i32_0 = arith.constant 0 : i32
    %c0_i32_1 = arith.constant 0 : i32
    return %c0_i32, %c0_i32_0 : i32, i32
  }
  func.func @transform_5(%arg0: i32) -> (i32, i32) {
    %c0_i32 = arith.constant 0 : i32
    %c0_i32_0 = arith.constant 0 : i32
    %c0_i32_1 = arith.constant 0 : i32
    return %c0_i32, %c0_i32_0 : i32, i32
  }
  func.func @transform_6(%arg0: i32) -> (i32, i32) {
    %c0_i32 = arith.constant 0 : i32
    %c0_i32_0 = arith.constant 0 : i32
    %c0_i32_1 = arith.constant 0 : i32
    return %c0_i32, %c0_i32_0 : i32, i32
  }
  func.func @transform_7(%arg0: i32) -> (i32, i32) {
    %c0_i32 = arith.constant 0 : i32
    %c0_i32_0 = arith.constant 0 : i32
    %c0_i32_1 = arith.constant 0 : i32
    return %c0_i32, %c0_i32_0 : i32, i32
  }
  func.func @transform_8(%arg0: i32) -> (i32, i32) {
    %c0_i32 = arith.constant 0 : i32
    %c0_i32_0 = arith.constant 0 : i32
    %c0_i32_1 = arith.constant 0 : i32
    return %c0_i32, %c0_i32_0 : i32, i32
  }
  func.func @transform_9(%arg0: i32) -> (i32, i32) {
    %c0_i32 = arith.constant 0 : i32
    %c0_i32_0 = arith.constant 0 : i32
    %c0_i32_1 = arith.constant 0 : i32
    return %c0_i32, %c0_i32_0 : i32, i32
  }
  func.func @transform_10(%arg0: i32) -> (i32, i32) {
    %c0_i32 = arith.constant 0 : i32
    %c0_i32_0 = arith.constant 0 : i32
    %c0_i32_1 = arith.constant 0 : i32
    return %c0_i32, %c0_i32_0 : i32, i32
  }
  func.func @transform_11(%arg0: i32) -> (i32, i32) {
    %c0_i32 = arith.constant 0 : i32
    %c0_i32_0 = arith.constant 0 : i32
    %c0_i32_1 = arith.constant 0 : i32
    return %c0_i32, %c0_i32_0 : i32, i32
  }
  func.func @transform_12(%arg0: i32) -> (i32, i32) {
    %c0_i32 = arith.constant 0 : i32
    %c0_i32_0 = arith.constant 0 : i32
    %c0_i32_1 = arith.constant 0 : i32
    return %c0_i32, %c0_i32_0 : i32, i32
  }
  func.func @transform_13(%arg0: i32) -> (i32, i32) {
    %c0_i32 = arith.constant 0 : i32
    %c0_i32_0 = arith.constant 0 : i32
    %c0_i32_1 = arith.constant 0 : i32
    return %c0_i32, %c0_i32_0 : i32, i32
  }
  func.func @transform_14(%arg0: i32) -> (i32, i32) {
    %c0_i32 = arith.constant 0 : i32
    %c0_i32_0 = arith.constant 0 : i32
    %c0_i32_1 = arith.constant 0 : i32
    return %c0_i32, %c0_i32_0 : i32, i32
  }
  func.func @transform_15(%arg0: i32) -> (i32, i32) {
    %c0_i32 = arith.constant 0 : i32
    %c0_i32_0 = arith.constant 0 : i32
    %c0_i32_1 = arith.constant 0 : i32
    return %c0_i32, %c0_i32_0 : i32, i32
  }
  func.func @transform_16(%arg0: i32) -> (i32, i32) {
    %c0_i32 = arith.constant 0 : i32
    %c0_i32_0 = arith.constant 0 : i32
    %c0_i32_1 = arith.constant 0 : i32
    return %c0_i32, %c0_i32_0 : i32, i32
  }
  func.func @transform_17(%arg0: i32) -> (i32, i32) {
    %c0_i32 = arith.constant 0 : i32
    %c0_i32_0 = arith.constant 0 : i32
    %c0_i32_1 = arith.constant 0 : i32
    return %c0_i32, %c0_i32_0 : i32, i32
  }
  func.func @transform_18(%arg0: i32) -> (i32, i32) {
    %c0_i32 = arith.constant 0 : i32
    %c0_i32_0 = arith.constant 0 : i32
    %c0_i32_1 = arith.constant 0 : i32
    return %c0_i32, %c0_i32_0 : i32, i32
  }
  func.func @transform_19(%arg0: i32) -> (i32, i32) {
    %c0_i32 = arith.constant 0 : i32
    %c0_i32_0 = arith.constant 0 : i32
    %c0_i32_1 = arith.constant 0 : i32
    return %c0_i32, %c0_i32_0 : i32, i32
  }
}

</mosaic_0001>

<bundles_post_ra>
// kernel: state_cond_image_skill_prior_net.1
= control target key start
LH: loop header
LB: loop body
LE: loop exit
PB: predicated region body
PF: predicated region fallthrough
CT: control target
= control target key end

     0   :  { %s3765_s0 = inlined_call_operand.vmem [shape: f32[2,768], index: 0, kind: input, shape index: {}]   ;;  %s3766_s1 = inlined_call_operand.hbm [shape: f32[2,8], index: 1, kind: input, shape index: {}]   ;;  %s3767_s2 = inlined_call_operand.hbm [shape: f32[768,512], index: 2, kind: input, shape index: {}]   ;;  %s3768_s3 = inlined_call_operand.hbm [shape: f32[1,512], index: 3, kind: input, shape index: {}]   ;;  %s3769_s4 = inlined_call_operand.hbm [shape: f32[512,256], index: 4, kind: input, shape index: {}]   ;;  %s3770_s5 = inlined_call_operand.hbm [shape: f32[1,256], index: 5, kind: input, shape index: {}]   ;;  %s3771_s6 = inlined_call_operand.hbm [shape: f32[256,128], index: 6, kind: input, shape index: {}]   ;;  %s3772_s7 = inlined_call_operand.hbm [shape: f32[1,128], index: 7, kind: input, shape index: {}]   ;;  %s3773_s8 = inlined_call_operand.vmem [shape: f32[128,32], index: 8, kind: input, shape index: {}]   ;;  %s3774_s9 = inlined_call_operand.hbm [shape: f32[1,32], index: 9, kind: input, shape index: {}]   ;;  %s3775_s10 = inlined_call_operand.hbm [shape: f32[32,32], index: 10, kind: input, shape index: {}]   ;;  %s3776_s11 = inlined_call_operand.hbm [shape: f32[8,32], index: 11, kind: input, shape index: {}]   ;;  %s3777_s12 = inlined_call_operand.hbm [shape: f32[1,32], index: 12, kind: input, shape index: {}]   ;;  %s3778_s13 = inlined_call_operand.hbm [shape: f32[32,32], index: 13, kind: input, shape index: {}]   ;;  %s3779_s14 = inlined_call_operand.hbm [shape: f32[1,32], index: 14, kind: input, shape index: {}]   ;;  %s3780_s15 = inlined_call_operand.hbm [shape: f32[32,32], index: 15, kind: input, shape index: {}]   ;;  %s3781_s16 = inlined_call_operand.hbm [shape: f32[1,32], index: 16, kind: input, shape index: {}]   ;;  %s3782_s17 = inlined_call_operand.vmem [shape: f32[32,20], index: 17, kind: input, shape index: {}]   ;;  %s3783_s18 = inlined_call_operand.hbm [shape: f32[1,20], index: 18, kind: input, shape index: {}]   ;;  %s3784_s19 = inlined_call_operand.hbm [shape: f32[2,20], index: 19, kind: output, shape index: {}]  }
   0x1   :  { %3790 = sst [smem:[#allocation39_spill]] %s3765_s0 }
   0x2   :  { %3791 = sst [smem:[#allocation40_spill]] %s3766_s1 }
   0x3   :  { %3792 = sst [smem:[#allocation41_spill]] %s3767_s2 }
   0x4   :  { %3793 = sst [smem:[#allocation42_spill]] %s3768_s3 }
   0x5   :  { %3794 = sst [smem:[#allocation43_spill]] %s3784_s19 }
   0x6   :  { %24 = vsyncpa [#allocation3], 0 }
   0x7   :  { %25 = vsyncpa [#allocation6], 0 }
   0x8   :  { %26 = vsyncpa [#allocation9], 0 }
   0x9   :  { %27 = vsyncpa [#allocation12], 0 }
   0xa   :  { %28 = vsyncpa [#allocation15], 0 }
   0xb   :  { %29 = vsyncpa [#allocation18], 0 }
   0xc   :  { %30 = vsyncpa [#allocation21], 0 }
   0xd   :  { %31 = vsyncpa [#allocation24], 0 }
   0xe   :  { %32 = vsyncpa [#allocation27], 0 }
   0xf   :  { %33 = vsyncpa [#allocation4], 0  ;;  %s3272_s0 = smov [#allocation5]   ;;  %s3795_s1 = sld [smem:[#allocation41_spill]] }
  0x10   :  { %s51_s30 = sshll.u32 %s3272_s0, 4  ;;  %s52_s30 = int_to_ptr.vmem [resolvable:$true] %s51_s30 }
  0x15   :  { %s2878_s22 = scalar_lea.hbm %s3795_s1, 49152 }
  0x16   :  { %p2879_p0 = scmp.ne.s32.totalorder %s3795_s1, %s2878_s22  ;;  %p2882_p1 = scmp.lt.u32.totalorder %s2878_s22, %s3795_s1 }
  0x18   :  { %p2884_p2 = pnand %p2882_p1, %p2879_p0 }
  0x1a   :  { %2887 = shalt.err (!%p2884_p2)
}
  0x1b   :  { %s2888_s3 = scalar_lea.vmem %s52_s30, 49152  ;;  %p2893_p4 = scmp.lt.s32.totalorder %s52_s30, %s52_s30 }
  0x1c   :  { %p2889_p3 = scmp.ne.s32.totalorder %s52_s30, %s2888_s3  ;;  %p2894_p5 = scmp.lt.s32.totalorder %s2888_s3, %s2888_s3 }
  0x1e   :  { %p2895_p6 = por %p2894_p5, %p2893_p4 }
  0x20   :  { %p2896_p7 = pnand %p2895_p6, %p2889_p3 }
  0x22   :  { %2899 = shalt.err (!%p2896_p7)
}
  0x23   :  { %s3273_s26 = smov 512   ;;  %s3274_s27 = smov 32  }
  0x24   :  { %57 = dma.hbm_to_vmem [thread:$0]  %s3795_s1, 49152, %s52_s30, [#allocation6], %s3273_s26, %s3273_s26, %s3274_s27  }
  0x25   :  { %s3275_s0 = smov [#allocation8]   ;;  %s2900_s2 = scalar_lea.hbm %s3769_s4, 16384 }
  0x26   :  { %s73_s20 = sshll.u32 %s3275_s0, 4  ;;  %p2901_p8 = scmp.ne.s32.totalorder %s3769_s4, %s2900_s2  ;;  %s74_s20 = int_to_ptr.vmem [resolvable:$true] %s73_s20 }
  0x27   :  { %p2904_p9 = scmp.lt.u32.totalorder %s2900_s2, %s3769_s4 }
  0x29   :  { %p2906_p10 = pnand %p2904_p9, %p2901_p8 }
  0x2b   :  { %2909 = shalt.err (!%p2906_p10)
}
  0x2c   :  { %s2910_s19 = scalar_lea.vmem %s74_s20, 16384  ;;  %p2915_p12 = scmp.lt.s32.totalorder %s74_s20, %s74_s20 }
  0x2d   :  { %p2911_p11 = scmp.ne.s32.totalorder %s74_s20, %s2910_s19  ;;  %p2916_p13 = scmp.lt.s32.totalorder %s2910_s19, %s2910_s19 }
  0x2f   :  { %p2917_p0 = por %p2916_p13, %p2915_p12 }
  0x31   :  { %p2918_p1 = pnand %p2917_p0, %p2911_p11 }
  0x33   :  { %2921 = shalt.err (!%p2918_p1)
}
  0x34   :  { %s3276_s30 = smov 256   ;;  %s3277_s1 = smov 16  }
  0x35   :  { %79 = dma.hbm_to_vmem [thread:$0]  %s3769_s4, 16384, %s74_s20, [#allocation9], %s3276_s30, %s3276_s30, %s3277_s1  }
  0x36   :  { %s3278_s28 = smov [#allocation11]   ;;  %s2922_s22 = scalar_lea.hbm %s3771_s6, 4096 }
  0x37   :  { %s95_s29 = sshll.u32 %s3278_s28, 4  ;;  %p2923_p2 = scmp.ne.s32.totalorder %s3771_s6, %s2922_s22  ;;  %s96_s29 = int_to_ptr.vmem [resolvable:$true] %s95_s29 }
  0x38   :  { %p2926_p3 = scmp.lt.u32.totalorder %s2922_s22, %s3771_s6 }
  0x3a   :  { %p2928_p4 = pnand %p2926_p3, %p2923_p2 }
  0x3c   :  { %2931 = shalt.err (!%p2928_p4)
}
  0x3d   :  { %s2932_s25 = scalar_lea.vmem %s96_s29, 4096  ;;  %p2937_p6 = scmp.lt.s32.totalorder %s96_s29, %s96_s29 }
  0x3e   :  { %p2933_p5 = scmp.ne.s32.totalorder %s96_s29, %s2932_s25  ;;  %p2938_p7 = scmp.lt.s32.totalorder %s2932_s25, %s2932_s25 }
  0x40   :  { %p2939_p8 = por %p2938_p7, %p2937_p6 }
  0x42   :  { %p2940_p9 = pnand %p2939_p8, %p2933_p5 }
  0x44   :  { %2943 = shalt.err (!%p2940_p9)
}
  0x45   :  { %s3279_s4 = smov 128   ;;  %s3280_s20 = smov 8  }
  0x46   :  { %101 = dma.hbm_to_vmem [thread:$0]  %s3771_s6, 4096, %s96_s29, [#allocation12], %s3279_s4, %s3279_s4, %s3280_s20  }
  0x47   :  { %s3281_s1 = smov [#allocation14]   ;;  %s3282_s27 = smov [#allocation17]  }
  0x48   :  { %s120_s26 = sshll.u32 %s3281_s1, 4  ;;  %s142_s28 = sshll.u32 %s3282_s27, 4  ;;  %s121_s26 = int_to_ptr.vmem [resolvable:$true] %s120_s26  ;;  %s143_s28 = int_to_ptr.vmem [resolvable:$true] %s142_s28 }
  0x49   :  { %s2944_s22 = scalar_lea.hbm %s3774_s9, 16 }
  0x4a   :  { %p2945_p10 = scmp.ne.s32.totalorder %s3774_s9, %s2944_s22  ;;  %p2948_p11 = scmp.lt.u32.totalorder %s2944_s22, %s3774_s9 }
  0x4c   :  { %p2950_p12 = pnand %p2948_p11, %p2945_p10 }
  0x4e   :  { %2953 = shalt.err (!%p2950_p12)
}
  0x4f   :  { %s2954_s6 = scalar_lea.vmem %s121_s26, 16  ;;  %s2958_s29 = scalar_lea.vmem %s121_s26, 32 }
  0x50   :  { %p2955_p13 = scmp.ne.s32.totalorder %s121_s26, %s2954_s6  ;;  %p2959_p0 = scmp.lt.s32.totalorder %s121_s26, %s121_s26 }
  0x51   :  { %p2960_p1 = scmp.lt.s32.totalorder %s2958_s29, %s2954_s6 }
  0x53   :  { %p2961_p2 = por %p2960_p1, %p2959_p0 }
  0x55   :  { %p2962_p3 = pnand %p2961_p2, %p2955_p13 }
  0x57   :  { %2965 = shalt.err (!%p2962_p3)
}
  0x58   :  { %123 = dma.hbm_to_vmem [thread:$0]  %s3774_s9, 16, %s121_s26, [#allocation15]  }
  0x59   :  { %s2966_s27 = scalar_lea.hbm %s3776_s11, 128 }
  0x5a   :  { %p2967_p4 = scmp.ne.s32.totalorder %s3776_s11, %s2966_s27  ;;  %p2970_p5 = scmp.lt.u32.totalorder %s2966_s27, %s3776_s11 }
  0x5c   :  { %p2972_p6 = pnand %p2970_p5, %p2967_p4 }
  0x5e   :  { %2975 = shalt.err (!%p2972_p6)
}
  0x5f   :  { %s2976_s23 = scalar_lea.vmem %s143_s28, 128  ;;  %p2981_p8 = scmp.lt.s32.totalorder %s143_s28, %s143_s28 }
  0x60   :  { %p2977_p7 = scmp.ne.s32.totalorder %s143_s28, %s2976_s23  ;;  %p2982_p9 = scmp.lt.s32.totalorder %s2976_s23, %s2976_s23 }
  0x62   :  { %p2983_p10 = por %p2982_p9, %p2981_p8 }
  0x64   :  { %p2984_p11 = pnand %p2983_p10, %p2977_p7 }
  0x66   :  { %2987 = shalt.err (!%p2984_p11)
}
  0x67   :  { %145 = dma.hbm_to_vmem [thread:$0]  %s3776_s11, 128, %s143_s28, [#allocation18]  }
  0x68   :  { %s3283_s19 = smov [#allocation20]   ;;  %s3284_s6 = smov [#allocation23]  }
  0x69   :  { %s161_s24 = sshll.u32 %s3283_s19, 4  ;;  %s183_s29 = sshll.u32 %s3284_s6, 4  ;;  %s162_s24 = int_to_ptr.vmem [resolvable:$true] %s161_s24  ;;  %s184_s29 = int_to_ptr.vmem [resolvable:$true] %s183_s29 }
  0x6a   :  { %s2988_s30 = scalar_lea.hbm %s3778_s13, 512 }
  0x6b   :  { %p2989_p12 = scmp.ne.s32.totalorder %s3778_s13, %s2988_s30  ;;  %p2992_p13 = scmp.lt.u32.totalorder %s2988_s30, %s3778_s13 }
  0x6d   :  { %p2994_p0 = pnand %p2992_p13, %p2989_p12 }
  0x6f   :  { %2997 = shalt.err (!%p2994_p0)
}
  0x70   :  { %s2998_s11 = scalar_lea.vmem %s162_s24, 512  ;;  %p3003_p2 = scmp.lt.s32.totalorder %s162_s24, %s162_s24 }
  0x71   :  { %p2999_p1 = scmp.ne.s32.totalorder %s162_s24, %s2998_s11  ;;  %p3004_p3 = scmp.lt.s32.totalorder %s2998_s11, %s2998_s11 }
  0x73   :  { %p3005_p4 = por %p3004_p3, %p3003_p2 }
  0x75   :  { %p3006_p5 = pnand %p3005_p4, %p2999_p1 }
  0x77   :  { %3009 = shalt.err (!%p3006_p5)
}
  0x78   :  { %167 = dma.hbm_to_vmem [thread:$0]  %s3778_s13, 512, %s162_s24, [#allocation21], %s3279_s4, %s3279_s4, %s3280_s20  }
  0x79   :  { %s3010_s9 = scalar_lea.hbm %s3780_s15, 512 }
  0x7a   :  { %p3011_p6 = scmp.ne.s32.totalorder %s3780_s15, %s3010_s9  ;;  %p3014_p7 = scmp.lt.u32.totalorder %s3010_s9, %s3780_s15 }
  0x7c   :  { %p3016_p8 = pnand %p3014_p7, %p3011_p6 }
  0x7e   :  { %3019 = shalt.err (!%p3016_p8)
}
  0x7f   :  { %s3020_s3 = scalar_lea.vmem %s184_s29, 512  ;;  %p3025_p10 = scmp.lt.s32.totalorder %s184_s29, %s184_s29 }
  0x80   :  { %p3021_p9 = scmp.ne.s32.totalorder %s184_s29, %s3020_s3  ;;  %p3026_p11 = scmp.lt.s32.totalorder %s3020_s3, %s3020_s3 }
  0x82   :  { %p3027_p12 = por %p3026_p11, %p3025_p10 }
  0x84   :  { %p3028_p13 = pnand %p3027_p12, %p3021_p9 }
  0x86   :  { %3031 = shalt.err (!%p3028_p13)
}
  0x87   :  { %189 = dma.hbm_to_vmem [thread:$0]  %s3780_s15, 512, %s184_s29, [#allocation24], %s3279_s4, %s3279_s4, %s3280_s20  }
  0x88   :  { %s3285_s30 = smov [#allocation2]   ;;  %s3286_s27 = smov [#allocation7]  }
  0x89   :  { %s42_s1 = sshll.u32 %s3285_s30, 4  ;;  %s64_s0 = sshll.u32 %s3286_s27, 4  ;;  %s43_s1 = int_to_ptr.vmem [resolvable:$true] %s42_s1  ;;  %s65_s0 = int_to_ptr.vmem [resolvable:$true] %s64_s0 }
  0x8a   :  { %s3796_s28 = sld [smem:[#allocation40_spill]] }
  0x90   :  { %s3032_s22 = scalar_lea.hbm %s3796_s28, 32 }
  0x91   :  { %p3033_p0 = scmp.ne.s32.totalorder %s3796_s28, %s3032_s22  ;;  %p3036_p1 = scmp.lt.u32.totalorder %s3032_s22, %s3796_s28 }
  0x93   :  { %p3038_p2 = pnand %p3036_p1, %p3033_p0 }
  0x95   :  { %3041 = shalt.err (!%p3038_p2)
}
  0x96   :  { %s3042_s15 = scalar_lea.vmem %s43_s1, 32  ;;  %p3047_p4 = scmp.lt.s32.totalorder %s43_s1, %s43_s1 }
  0x97   :  { %p3043_p3 = scmp.ne.s32.totalorder %s43_s1, %s3042_s15  ;;  %p3048_p5 = scmp.lt.s32.totalorder %s3042_s15, %s3042_s15 }
  0x99   :  { %p3049_p6 = por %p3048_p5, %p3047_p4 }
  0x9b   :  { %p3050_p7 = pnand %p3049_p6, %p3043_p3 }
  0x9d   :  { %3053 = shalt.err (!%p3050_p7)
}
  0x9e   :  { %45 = dma.hbm_to_vmem [thread:$0]  %s3796_s28, 32, %s43_s1, [#allocation3]  }
  0x9f   :  { %s3797_s3 = sld [smem:[#allocation42_spill]] }
  0xa5   :  { %s3054_s13 = scalar_lea.hbm %s3797_s3, 64 }
  0xa6   :  { %p3055_p8 = scmp.ne.s32.totalorder %s3797_s3, %s3054_s13  ;;  %p3058_p9 = scmp.lt.u32.totalorder %s3054_s13, %s3797_s3 }
  0xa8   :  { %p3060_p10 = pnand %p3058_p9, %p3055_p8 }
  0xaa   :  { %3063 = shalt.err (!%p3060_p10)
}
  0xab   :  { %s3064_s11 = scalar_lea.vmem %s65_s0, 64  ;;  %p3069_p12 = scmp.lt.s32.totalorder %s65_s0, %s65_s0 }
  0xac   :  { %p3065_p11 = scmp.ne.s32.totalorder %s65_s0, %s3064_s11  ;;  %p3070_p13 = scmp.lt.s32.totalorder %s3064_s11, %s3064_s11 }
  0xae   :  { %p3071_p0 = por %p3070_p13, %p3069_p12 }
  0xb0   :  { %p3072_p1 = pnand %p3071_p0, %p3065_p11 }
  0xb2   :  { %3075 = shalt.err (!%p3072_p1)
}
  0xb3   :  { %67 = dma.hbm_to_vmem [thread:$0]  %s3797_s3, 64, %s65_s0, [#allocation6]  }
  0xb4   :  { %s3287_s22 = smov [#allocation10]   ;;  %s3288_s23 = smov [#allocation13]  }
  0xb5   :  { %s86_s2 = sshll.u32 %s3287_s22, 4  ;;  %s108_s9 = sshll.u32 %s3288_s23, 4  ;;  %s87_s2 = int_to_ptr.vmem [resolvable:$true] %s86_s2  ;;  %s109_s9 = int_to_ptr.vmem [resolvable:$true] %s108_s9 }
  0xb6   :  { %s3076_s29 = scalar_lea.hbm %s3770_s5, 32 }
  0xb7   :  { %p3077_p2 = scmp.ne.s32.totalorder %s3770_s5, %s3076_s29  ;;  %p3080_p3 = scmp.lt.u32.totalorder %s3076_s29, %s3770_s5 }
  0xb9   :  { %p3082_p4 = pnand %p3080_p3, %p3077_p2 }
  0xbb   :  { %3085 = shalt.err (!%p3082_p4)
}
  0xbc   :  { %s3086_s0 = scalar_lea.vmem %s87_s2, 32  ;;  %p3091_p6 = scmp.lt.s32.totalorder %s87_s2, %s87_s2 }
  0xbd   :  { %p3087_p5 = scmp.ne.s32.totalorder %s87_s2, %s3086_s0  ;;  %p3092_p7 = scmp.lt.s32.totalorder %s3086_s0, %s3086_s0 }
  0xbf   :  { %p3093_p8 = por %p3092_p7, %p3091_p6 }
  0xc1   :  { %p3094_p9 = pnand %p3093_p8, %p3087_p5 }
  0xc3   :  { %3097 = shalt.err (!%p3094_p9)
}
  0xc4   :  { %89 = dma.hbm_to_vmem [thread:$0]  %s3770_s5, 32, %s87_s2, [#allocation9]  }
  0xc5   :  { %s3098_s21 = scalar_lea.hbm %s3772_s7, 16 }
  0xc6   :  { %p3099_p10 = scmp.ne.s32.totalorder %s3772_s7, %s3098_s21  ;;  %p3102_p11 = scmp.lt.u32.totalorder %s3098_s21, %s3772_s7 }
  0xc8   :  { %p3104_p12 = pnand %p3102_p11, %p3099_p10 }
  0xca   :  { %3107 = shalt.err (!%p3104_p12)
}
  0xcb   :  { %s3108_s23 = scalar_lea.vmem %s109_s9, 16  ;;  %s3112_s26 = scalar_lea.vmem %s109_s9, 32 }
  0xcc   :  { %p3109_p13 = scmp.ne.s32.totalorder %s109_s9, %s3108_s23  ;;  %p3113_p0 = scmp.lt.s32.totalorder %s109_s9, %s109_s9 }
  0xcd   :  { %p3114_p1 = scmp.lt.s32.totalorder %s3112_s26, %s3108_s23 }
  0xcf   :  { %p3115_p2 = por %p3114_p1, %p3113_p0 }
  0xd1   :  { %p3116_p3 = pnand %p3115_p2, %p3109_p13 }
  0xd3   :  { %3119 = shalt.err (!%p3116_p3)
}
  0xd4   :  { %111 = dma.hbm_to_vmem [thread:$0]  %s3772_s7, 16, %s109_s9, [#allocation12]  }
  0xd5   :  { %s3289_s15 = smov [#allocation16]   ;;  %s3290_s19 = smov [#allocation19]  }
  0xd6   :  { %s129_s29 = sshll.u32 %s3289_s15, 4  ;;  %s152_s6 = sshll.u32 %s3290_s19, 4  ;;  %s130_s29 = int_to_ptr.vmem [resolvable:$true] %s129_s29  ;;  %s153_s6 = int_to_ptr.vmem [resolvable:$true] %s152_s6 }
  0xd7   :  { %s3120_s0 = scalar_lea.hbm %s3775_s10, 512 }
  0xd8   :  { %p3121_p4 = scmp.ne.s32.totalorder %s3775_s10, %s3120_s0  ;;  %p3124_p5 = scmp.lt.u32.totalorder %s3120_s0, %s3775_s10 }
  0xda   :  { %p3126_p6 = pnand %p3124_p5, %p3121_p4 }
  0xdc   :  { %3129 = shalt.err (!%p3126_p6)
}
  0xdd   :  { %s3130_s7 = scalar_lea.vmem %s130_s29, 512  ;;  %p3135_p8 = scmp.lt.s32.totalorder %s130_s29, %s130_s29 }
  0xde   :  { %p3131_p7 = scmp.ne.s32.totalorder %s130_s29, %s3130_s7  ;;  %p3136_p9 = scmp.lt.s32.totalorder %s3130_s7, %s3130_s7 }
  0xe0   :  { %p3137_p10 = por %p3136_p9, %p3135_p8 }
  0xe2   :  { %p3138_p11 = pnand %p3137_p10, %p3131_p7 }
  0xe4   :  { %3141 = shalt.err (!%p3138_p11)
}
  0xe5   :  { %135 = dma.hbm_to_vmem [thread:$0]  %s3775_s10, 512, %s130_s29, [#allocation15], %s3279_s4, %s3279_s4, %s3280_s20  }
  0xe6   :  { %s3142_s28 = scalar_lea.hbm %s3777_s12, 16 }
  0xe7   :  { %p3143_p12 = scmp.ne.s32.totalorder %s3777_s12, %s3142_s28  ;;  %p3146_p13 = scmp.lt.u32.totalorder %s3142_s28, %s3777_s12 }
  0xe9   :  { %p3148_p0 = pnand %p3146_p13, %p3143_p12 }
  0xeb   :  { %3151 = shalt.err (!%p3148_p0)
}
  0xec   :  { %s3152_s2 = scalar_lea.vmem %s153_s6, 16  ;;  %s3156_s15 = scalar_lea.vmem %s153_s6, 32 }
  0xed   :  { %p3153_p1 = scmp.ne.s32.totalorder %s153_s6, %s3152_s2  ;;  %p3157_p2 = scmp.lt.s32.totalorder %s153_s6, %s153_s6 }
  0xee   :  { %p3158_p3 = scmp.lt.s32.totalorder %s3156_s15, %s3152_s2 }
  0xf0   :  { %p3159_p4 = por %p3158_p3, %p3157_p2 }
  0xf2   :  { %p3160_p5 = pnand %p3159_p4, %p3153_p1 }
  0xf4   :  { %3163 = shalt.err (!%p3160_p5)
}
  0xf5   :  { %155 = dma.hbm_to_vmem [thread:$0]  %s3777_s12, 16, %s153_s6, [#allocation18]  }
  0xf6   :  { %s3291_s20 = smov [#allocation22]   ;;  %s3292_s19 = smov [#allocation25]  }
  0xf7   :  { %s174_s29 = sshll.u32 %s3291_s20, 4  ;;  %s196_s25 = sshll.u32 %s3292_s19, 4  ;;  %s175_s29 = int_to_ptr.vmem [resolvable:$true] %s174_s29  ;;  %s197_s25 = int_to_ptr.vmem [resolvable:$true] %s196_s25 }
  0xf8   :  { %s3164_s3 = scalar_lea.hbm %s3779_s14, 16 }
  0xf9   :  { %p3165_p6 = scmp.ne.s32.totalorder %s3779_s14, %s3164_s3  ;;  %p3168_p7 = scmp.lt.u32.totalorder %s3164_s3, %s3779_s14 }
  0xfb   :  { %p3170_p8 = pnand %p3168_p7, %p3165_p6 }
  0xfd   :  { %3173 = shalt.err (!%p3170_p8)
}
  0xfe   :  { %s3174_s12 = scalar_lea.vmem %s175_s29, 16  ;;  %s3178_s6 = scalar_lea.vmem %s175_s29, 32 }
  0xff   :  { %p3175_p9 = scmp.ne.s32.totalorder %s175_s29, %s3174_s12  ;;  %p3179_p10 = scmp.lt.s32.totalorder %s175_s29, %s175_s29 }
 0x100   :  { %p3180_p11 = scmp.lt.s32.totalorder %s3178_s6, %s3174_s12 }
 0x102   :  { %p3181_p12 = por %p3180_p11, %p3179_p10 }
 0x104   :  { %p3182_p13 = pnand %p3181_p12, %p3175_p9 }
 0x106   :  { %3185 = shalt.err (!%p3182_p13)
}
 0x107   :  { %177 = dma.hbm_to_vmem [thread:$0]  %s3779_s14, 16, %s175_s29, [#allocation21]  }
 0x108   :  { %s3186_s28 = scalar_lea.hbm %s3781_s16, 16 }
 0x109   :  { %p3187_p0 = scmp.ne.s32.totalorder %s3781_s16, %s3186_s28  ;;  %p3190_p1 = scmp.lt.u32.totalorder %s3186_s28, %s3781_s16 }
 0x10b   :  { %p3192_p2 = pnand %p3190_p1, %p3187_p0 }
 0x10d   :  { %3195 = shalt.err (!%p3192_p2)
}
 0x10e   :  { %s3196_s2 = scalar_lea.vmem %s197_s25, 16  ;;  %s3200_s15 = scalar_lea.vmem %s197_s25, 32 }
 0x10f   :  { %p3197_p3 = scmp.ne.s32.totalorder %s197_s25, %s3196_s2  ;;  %p3201_p4 = scmp.lt.s32.totalorder %s197_s25, %s197_s25 }
 0x110   :  { %p3202_p5 = scmp.lt.s32.totalorder %s3200_s15, %s3196_s2 }
 0x112   :  { %p3203_p6 = por %p3202_p5, %p3201_p4 }
 0x114   :  { %p3204_p7 = pnand %p3203_p6, %p3197_p3 }
 0x116   :  { %3207 = shalt.err (!%p3204_p7)
}
 0x117   :  { %199 = dma.hbm_to_vmem [thread:$0]  %s3781_s16, 16, %s197_s25, [#allocation24]  }
 0x118   :  { %s3293_s4 = smov [#allocation26]   ;;  %s3208_s13 = scalar_lea.hbm %s3783_s18, 16 }
 0x119   :  { %s208_s20 = sshll.u32 %s3293_s4, 4  ;;  %p3209_p8 = scmp.ne.s32.totalorder %s3783_s18, %s3208_s13  ;;  %s209_s20 = int_to_ptr.vmem [resolvable:$true] %s208_s20 }
 0x11a   :  { %p3212_p9 = scmp.lt.u32.totalorder %s3208_s13, %s3783_s18 }
 0x11c   :  { %p3214_p10 = pnand %p3212_p9, %p3209_p8 }
 0x11e   :  { %3217 = shalt.err (!%p3214_p10)
}
 0x11f   :  { %s3218_s27 = scalar_lea.vmem %s209_s20, 16  ;;  %s3222_s16 = scalar_lea.vmem %s209_s20, 32 }
 0x120   :  { %p3219_p11 = scmp.ne.s32.totalorder %s209_s20, %s3218_s27  ;;  %p3223_p12 = scmp.lt.s32.totalorder %s209_s20, %s209_s20 }
 0x121   :  { %p3224_p13 = scmp.lt.s32.totalorder %s3222_s16, %s3218_s27 }
 0x123   :  { %p3225_p0 = por %p3224_p13, %p3223_p12 }
 0x125   :  { %p3226_p1 = pnand %p3225_p0, %p3219_p11 }
 0x127   :  { %3229 = shalt.err (!%p3226_p1)
}
 0x128   :  { %211 = dma.hbm_to_vmem [thread:$0]  %s3783_s18, 16, %s209_s20, [#allocation27]  }
 0x129   :  { %3252 = dma.done.wait [#allocation3], 32  }
 0x12a   :  { %3253 = vsyncadd [#allocation3], 4294967264 }
 0x12b   :  { %3254 = dma.done.wait [#allocation6], 49216  }
 0x12c   :  { %3255 = vsyncadd [#allocation6], 4294918080 }
 0x12d   :  { %3256 = dma.done.wait [#allocation9], 16416  }
 0x12e   :  { %3257 = vsyncadd [#allocation9], 4294950880 }
 0x12f   :  { %3258 = dma.done.wait [#allocation12], 4112  }
 0x130   :  { %3259 = vsyncadd [#allocation12], 4294963184 }
 0x131   :  { %3260 = dma.done.wait [#allocation15], 528  }
 0x132   :  { %3261 = vsyncadd [#allocation15], 4294966768 }
 0x133   :  { %3262 = dma.done.wait [#allocation18], 144  }
 0x134   :  { %3263 = vsyncadd [#allocation18], 4294967152 }
 0x135   :  { %3264 = dma.done.wait [#allocation21], 528  }
 0x136   :  { %3265 = vsyncadd [#allocation21], 4294966768 }
 0x137   :  { %3266 = dma.done.wait [#allocation24], 528  }
 0x138   :  { %3267 = vsyncadd [#allocation24], 4294966768 }
 0x139   :  { %3268 = dma.done.wait [#allocation27], 16  }
 0x13a   :  { %3269 = vsyncadd [#allocation27], 4294967280  ;;  %v263_v0 = vld [vmem:[#allocation5 + $0x8] sm:$0xff]  ;;  %v265_v2 = vld [vmem:[#allocation5 + $0x18] sm:$0xff]  ;;  %s3798_s6 = sld [smem:[#allocation39_spill]]  ;;  %vm3296_vm0 = vmmov 0  }
 0x13b   :  { %v267_v1 = vld [vmem:[#allocation5 + $0x28] sm:$0xff]  ;;  %v269_v4 = vld [vmem:[#allocation5 + $0x38] sm:$0xff]  ;;  %v262_v5 = vld [vmem:[#allocation5] sm:$0xff]  ;;  %vm1633_vm1 = vcmask 64512   ;;  %vm1707_vm2 = vcmask 261120   ;;  %s3298_s10 = smov [#allocation28]  }
 0x13c   :  { %v2242_v3 = vpack.c.bf16 %v267_v1, %v263_v0  ;;  %v266_v6 = vld [vmem:[#allocation5 + $0x20] sm:$0xff]  ;;  %v2434_v7 = vpack.c.bf16 %v269_v4, %v265_v2  ;;  %v264_v9 = vld [vmem:[#allocation5 + $0x10] sm:$0xff]  ;;  %v271_v11 = vld [vmem:[#allocation5 + $0x48] sm:$0xff]  ;;  %s2055_s4 = sshll.u32 %s3298_s10, 4  ;;  %vm2047_vm3 = vcmask 156672   ;;  %s2056_s4 = int_to_ptr.vmem [resolvable:$true] %s2055_s4 }
 0x13d   :  { %v2244_v8 = vpack.c.bf16 %v266_v6, %v262_v5  ;;  %v268_v10 = vld [vmem:[#allocation5 + $0x30] sm:$0xff]  ;;  %v275_v13 = vld [vmem:[#allocation5 + $0x68] sm:$0xff]  ;;  %v273_v14 = vld [vmem:[#allocation5 + $0x58] sm:$0xff]  ;;  %p3235_p3 = scmp.lt.s32.totalorder %s2056_s4, %s2056_s4 }
 0x13e   :  { %2243 = vmatprep.subr.bf16.mxu0 %v2242_v3  ;;  %v2436_v12 = vpack.c.bf16 %v268_v10, %v264_v9  ;;  %v277_v15 = vld [vmem:[#allocation5 + $0x78] sm:$0xff]  ;;  %2435 = vmatprep.subr.bf16.mxu1 %v2434_v7  ;;  %v2246_v16 = vpack.c.bf16 %v275_v13, %v271_v11  ;;  %v270_v18 = vld [vmem:[#allocation5 + $0x40] sm:$0xff]  ;;  %v272_v20 = vld [vmem:[#allocation5 + $0x50] sm:$0xff] }
 0x13f   :  { %2245 = vmatpush1.bf16.msra.mxu0 %v2244_v8  ;;  %v2438_v17 = vpack.c.bf16 %v277_v15, %v273_v14  ;;  %v274_v19 = vld [vmem:[#allocation5 + $0x60] sm:$0xff]  ;;  %v276_v22 = vld [vmem:[#allocation5 + $0x70] sm:$0xff]  ;;  %v279_v23 = vld [vmem:[#allocation5 + $0x88] sm:$0xff] }
 0x140   :  { %2437 = vmatpush1.bf16.msra.mxu1 %v2436_v12  ;;  %v2248_v21 = vpack.c.bf16 %v274_v19, %v270_v18  ;;  %v283_v24 = vld [vmem:[#allocation5 + $0xa8] sm:$0xff]  ;;  %2247 = vmatprep.subr.bf16.mxu0 %v2246_v16  ;;  %v2440_v25 = vpack.c.bf16 %v276_v22, %v272_v20  ;;  %v281_v27 = vld [vmem:[#allocation5 + $0x98] sm:$0xff]  ;;  %v278_v29 = vld [vmem:[#allocation5 + $0x80] sm:$0xff] }
 0x141   :  { %2439 = vmatprep.subr.bf16.mxu1 %v2438_v17  ;;  %v2250_v26 = vpack.c.bf16 %v283_v24, %v279_v23  ;;  %v285_v28 = vld [vmem:[#allocation5 + $0xb8] sm:$0xff]  ;;  %v282_v31 = vld [vmem:[#allocation5 + $0xa0] sm:$0xff]  ;;  %v280_v32 = vld [vmem:[#allocation5 + $0x90] sm:$0xff] }
 0x142   :  { %v2442_v30 = vpack.c.bf16 %v285_v28, %v281_v27  ;;  %v284_v33 = vld [vmem:[#allocation5 + $0xb0] sm:$0xff]  ;;  %v2252_v34 = vpack.c.bf16 %v282_v31, %v278_v29  ;;  %v287_v35 = vld [vmem:[#allocation5 + $0xc8] sm:$0xff]  ;;  %v289_v37 = vld [vmem:[#allocation5 + $0xd8] sm:$0xff] }
 0x143   :  { %2249 = vmatpush1.bf16.msra.mxu0 %v2248_v21  ;;  %v291_v36 = vld [vmem:[#allocation5 + $0xe8] sm:$0xff]  ;;  %v2444_v38 = vpack.c.bf16 %v284_v33, %v280_v32  ;;  %v293_v40 = vld [vmem:[#allocation5 + $0xf8] sm:$0xff]  ;;  %v286_v41 = vld [vmem:[#allocation5 + $0xc0] sm:$0xff] }
 0x144   :  { %2441 = vmatpush1.bf16.msra.mxu1 %v2440_v25  ;;  %2251 = vmatprep.subr.bf16.mxu0 %v2250_v26  ;;  %v2254_v39 = vpack.c.bf16 %v291_v36, %v287_v35  ;;  %v290_v42 = vld [vmem:[#allocation5 + $0xe0] sm:$0xff]  ;;  %v2446_v43 = vpack.c.bf16 %v293_v40, %v289_v37  ;;  %v288_v44 = vld [vmem:[#allocation5 + $0xd0] sm:$0xff]  ;;  %v295_v46 = vld [vmem:[#allocation5 + $0x108] sm:$0xff] }
 0x145   :  { %2443 = vmatprep.subr.bf16.mxu1 %v2442_v30  ;;  %v292_v45 = vld [vmem:[#allocation5 + $0xf0] sm:$0xff]  ;;  %v299_v47 = vld [vmem:[#allocation5 + $0x128] sm:$0xff]  ;;  %v297_v48 = vld [vmem:[#allocation5 + $0x118] sm:$0xff]  ;;  %v2256_v50 = vpack.c.bf16 %v290_v42, %v286_v41 }
 0x146   :  { %v301_v49 = vld [vmem:[#allocation5 + $0x138] sm:$0xff]  ;;  %v2448_v51 = vpack.c.bf16 %v292_v45, %v288_v44  ;;  %v2258_v52 = vpack.c.bf16 %v299_v47, %v295_v46  ;;  %v294_v53 = vld [vmem:[#allocation5 + $0x100] sm:$0xff]  ;;  %v296_v55 = vld [vmem:[#allocation5 + $0x110] sm:$0xff]  ;;  %v648_v46 = vlaneseq  ;;  %v3294_v47 = vmov 1983009808  }
 0x147   :  { %2253 = vmatpush1.bf16.msra.mxu0 %v2252_v34  ;;  %v298_v54 = vld [vmem:[#allocation5 + $0x120] sm:$0xff]  ;;  %v2450_v56 = vpack.c.bf16 %v301_v49, %v297_v48  ;;  %v300_v57 = vld [vmem:[#allocation5 + $0x130] sm:$0xff]  ;;  %v303_v58 = vld [vmem:[#allocation5 + $0x148] sm:$0xff]  ;;  %v672_v48 = vunpack.c.l.s4 %v3294_v47 }
 0x148   :  { %2445 = vmatpush1.bf16.msra.mxu1 %v2444_v38  ;;  %2255 = vmatprep.subr.bf16.mxu0 %v2254_v39  ;;  %v307_v59 = vld [vmem:[#allocation5 + $0x168] sm:$0xff]  ;;  %v305_v60 = vld [vmem:[#allocation5 + $0x158] sm:$0xff]  ;;  %v2260_v62 = vpack.c.bf16 %v298_v54, %v294_v53  ;;  %v2452_v63 = vpack.c.bf16 %v300_v57, %v296_v55  ;;  %v302_v1 = vld [vmem:[#allocation5 + $0x140] sm:$0xff] }
 0x149   :  { %2447 = vmatprep.subr.bf16.mxu1 %v2446_v43  ;;  %v309_v61 = vld [vmem:[#allocation5 + $0x178] sm:$0xff]  ;;  %v2262_v0 = vpack.c.bf16 %v307_v59, %v303_v58  ;;  %v306_v2 = vld [vmem:[#allocation5 + $0x160] sm:$0xff]  ;;  %v304_v3 = vld [vmem:[#allocation5 + $0x150] sm:$0xff] }
 0x14a   :  { %v2454_v4 = vpack.c.bf16 %v309_v61, %v305_v60  ;;  %v308_v5 = vld [vmem:[#allocation5 + $0x170] sm:$0xff]  ;;  %v311_v6 = vld [vmem:[#allocation5 + $0x188] sm:$0xff]  ;;  %v313_v8 = vld [vmem:[#allocation5 + $0x198] sm:$0xff]  ;;  %v2264_v10 = vpack.c.bf16 %v306_v2, %v302_v1  ;;  %v3603_v61 = vshrl.u32 %v648_v46, 7 }
 0x14b   :  { %2257 = vmatpush1.bf16.msra.mxu0 %v2256_v50  ;;  %v315_v7 = vld [vmem:[#allocation5 + $0x1a8] sm:$0xff]  ;;  %v317_v9 = vld [vmem:[#allocation5 + $0x1b8] sm:$0xff]  ;;  %v2456_v11 = vpack.c.bf16 %v308_v5, %v304_v3  ;;  %v310_v13 = vld [vmem:[#allocation5 + $0x180] sm:$0xff] }
 0x14c   :  { %2449 = vmatpush1.bf16.msra.mxu1 %v2448_v51  ;;  %2259 = vmatprep.subr.bf16.mxu0 %v2258_v52  ;;  %v2266_v12 = vpack.c.bf16 %v315_v7, %v311_v6  ;;  %v314_v14 = vld [vmem:[#allocation5 + $0x1a0] sm:$0xff]  ;;  %v312_v15 = vld [vmem:[#allocation5 + $0x190] sm:$0xff]  ;;  %v2458_v16 = vpack.c.bf16 %v317_v9, %v313_v8  ;;  %v319_v18 = vld [vmem:[#allocation5 + $0x1c8] sm:$0xff] }
 0x14d   :  { %2451 = vmatprep.subr.bf16.mxu1 %v2450_v56  ;;  %v316_v17 = vld [vmem:[#allocation5 + $0x1b0] sm:$0xff]  ;;  %v323_v19 = vld [vmem:[#allocation5 + $0x1e8] sm:$0xff]  ;;  %v321_v20 = vld [vmem:[#allocation5 + $0x1d8] sm:$0xff]  ;;  %v2268_v22 = vpack.c.bf16 %v314_v14, %v310_v13 }
 0x14e   :  { %v325_v21 = vld [vmem:[#allocation5 + $0x1f8] sm:$0xff]  ;;  %v2460_v23 = vpack.c.bf16 %v316_v17, %v312_v15  ;;  %v2270_v24 = vpack.c.bf16 %v323_v19, %v319_v18  ;;  %v318_v25 = vld [vmem:[#allocation5 + $0x1c0] sm:$0xff]  ;;  %v320_v27 = vld [vmem:[#allocation5 + $0x1d0] sm:$0xff] }
 0x14f   :  { %2261 = vmatpush1.bf16.msra.mxu0 %v2260_v62  ;;  %v322_v26 = vld [vmem:[#allocation5 + $0x1e0] sm:$0xff]  ;;  %v2462_v28 = vpack.c.bf16 %v325_v21, %v321_v20  ;;  %v324_v29 = vld [vmem:[#allocation5 + $0x1f0] sm:$0xff]  ;;  %v327_v30 = vld [vmem:[#allocation5 + $0x208] sm:$0xff]  ;;  %v673_v62 = vunpack.c.0.s8 %v672_v48 }
 0x150   :  { %2453 = vmatpush1.bf16.msra.mxu1 %v2452_v63  ;;  %2263 = vmatprep.subr.bf16.mxu0 %v2262_v0  ;;  %v331_v31 = vld [vmem:[#allocation5 + $0x228] sm:$0xff]  ;;  %v329_v32 = vld [vmem:[#allocation5 + $0x218] sm:$0xff]  ;;  %v2272_v34 = vpack.c.bf16 %v322_v26, %v318_v25  ;;  %v2464_v35 = vpack.c.bf16 %v324_v29, %v320_v27  ;;  %v326_v37 = vld [vmem:[#allocation5 + $0x200] sm:$0xff] }
 0x151   :  { %2455 = vmatprep.subr.bf16.mxu1 %v2454_v4  ;;  %v333_v33 = vld [vmem:[#allocation5 + $0x238] sm:$0xff]  ;;  %v2274_v36 = vpack.c.bf16 %v331_v31, %v327_v30  ;;  %v330_v38 = vld [vmem:[#allocation5 + $0x220] sm:$0xff]  ;;  %v328_v39 = vld [vmem:[#allocation5 + $0x210] sm:$0xff] }
 0x152   :  { %v2466_v40 = vpack.c.bf16 %v333_v33, %v329_v32  ;;  %v332_v41 = vld [vmem:[#allocation5 + $0x230] sm:$0xff]  ;;  %v335_v42 = vld [vmem:[#allocation5 + $0x248] sm:$0xff]  ;;  %v337_v44 = vld [vmem:[#allocation5 + $0x258] sm:$0xff]  ;;  %v2276_v49 = vpack.c.bf16 %v330_v38, %v326_v37 }
 0x153   :  { %2265 = vmatpush1.bf16.msra.mxu0 %v2264_v10  ;;  %v339_v43 = vld [vmem:[#allocation5 + $0x268] sm:$0xff]  ;;  %v341_v45 = vld [vmem:[#allocation5 + $0x278] sm:$0xff]  ;;  %v2468_v50 = vpack.c.bf16 %v332_v41, %v328_v39  ;;  %v334_v52 = vld [vmem:[#allocation5 + $0x240] sm:$0xff] }
 0x154   :  { %2457 = vmatpush1.bf16.msra.mxu1 %v2456_v11  ;;  %2267 = vmatprep.subr.bf16.mxu0 %v2266_v12  ;;  %v2278_v51 = vpack.c.bf16 %v339_v43, %v335_v42  ;;  %v338_v53 = vld [vmem:[#allocation5 + $0x260] sm:$0xff]  ;;  %v336_v54 = vld [vmem:[#allocation5 + $0x250] sm:$0xff]  ;;  %v2470_v55 = vpack.c.bf16 %v341_v45, %v337_v44  ;;  %v343_v57 = vld [vmem:[#allocation5 + $0x288] sm:$0xff]  ;;  %v3606_v11 = vsub.s32 %v673_v62, %v3603_v61 }
 0x155   :  { %2459 = vmatprep.subr.bf16.mxu1 %v2458_v16  ;;  %v340_v56 = vld [vmem:[#allocation5 + $0x270] sm:$0xff]  ;;  %v347_v58 = vld [vmem:[#allocation5 + $0x2a8] sm:$0xff]  ;;  %v345_v59 = vld [vmem:[#allocation5 + $0x298] sm:$0xff]  ;;  %v2280_v63 = vpack.c.bf16 %v338_v53, %v334_v52 }
 0x156   :  { %v349_v60 = vld [vmem:[#allocation5 + $0x2b8] sm:$0xff]  ;;  %v2472_v0 = vpack.c.bf16 %v340_v56, %v336_v54  ;;  %v2282_v1 = vpack.c.bf16 %v347_v58, %v343_v57  ;;  %v342_v2 = vld [vmem:[#allocation5 + $0x280] sm:$0xff]  ;;  %v344_v4 = vld [vmem:[#allocation5 + $0x290] sm:$0xff] }
 0x157   :  { %2269 = vmatpush1.bf16.msra.mxu0 %v2268_v22  ;;  %v346_v3 = vld [vmem:[#allocation5 + $0x2a0] sm:$0xff]  ;;  %v2474_v5 = vpack.c.bf16 %v349_v60, %v345_v59  ;;  %v348_v6 = vld [vmem:[#allocation5 + $0x2b0] sm:$0xff]  ;;  %v351_v7 = vld [vmem:[#allocation5 + $0x2c8] sm:$0xff] }
 0x158   :  { %2461 = vmatpush1.bf16.msra.mxu1 %v2460_v23  ;;  %2271 = vmatprep.subr.bf16.mxu0 %v2270_v24  ;;  %v355_v8 = vld [vmem:[#allocation5 + $0x2e8] sm:$0xff]  ;;  %v353_v9 = vld [vmem:[#allocation5 + $0x2d8] sm:$0xff]  ;;  %v2284_v12 = vpack.c.bf16 %v346_v3, %v342_v2  ;;  %v350_v13 = vld [vmem:[#allocation5 + $0x2c0] sm:$0xff]  ;;  %v2476_v14 = vpack.c.bf16 %v348_v6, %v344_v4 }
 0x159   :  { %2463 = vmatprep.subr.bf16.mxu1 %v2462_v28  ;;  %v357_v10 = vld [vmem:[#allocation5 + $0x2f8] sm:$0xff]  ;;  %v2286_v15 = vpack.c.bf16 %v355_v8, %v351_v7  ;;  %v354_v16 = vld [vmem:[#allocation5 + $0x2e0] sm:$0xff]  ;;  %v352_v17 = vld [vmem:[#allocation5 + $0x2d0] sm:$0xff] }
 0x15a   :  { %v356_v18 = vld [vmem:[#allocation5 + $0x2f0] sm:$0xff]  ;;  %v2478_v19 = vpack.c.bf16 %v357_v10, %v353_v9  ;;  %v359_v20 = vld [vmem:[#allocation5 + $0x308] sm:$0xff]  ;;  %v3611_v22 = vld [vmem:[%s3798_s6] sm:$0xff]  ;;  %v2288_v26 = vpack.c.bf16 %v354_v16, %v350_v13 }
 0x15b   :  { %2273 = vmatpush1.bf16.msra.mxu0 %v2272_v34  ;;  %v363_v21 = vld [vmem:[#allocation5 + $0x328] sm:$0xff]  ;;  %v361_v23 = vld [vmem:[#allocation5 + $0x318] sm:$0xff]  ;;  %v3615_v25 = vrot.slane %v3611_v22, %v3606_v11  ;;  %v2480_v27 = vpack.c.bf16 %v356_v18, %v352_v17  ;;  %v358_v29 = vld [vmem:[#allocation5 + $0x300] sm:$0xff]  ;;  %v670_v8 = vcombine.high %v3611_v22, %v3611_v22 }
 0x15c   :  { %2465 = vmatpush1.bf16.msra.mxu1 %v2464_v35  ;;  %2275 = vmatprep.subr.bf16.mxu0 %v2274_v36  ;;  %v365_v24 = vld [vmem:[#allocation5 + $0x338] sm:$0xff]  ;;  %v2290_v28 = vpack.c.bf16 %v363_v21, %v359_v20  ;;  %v362_v30 = vld [vmem:[#allocation5 + $0x320] sm:$0xff]  ;;  %v360_v31 = vld [vmem:[#allocation5 + $0x310] sm:$0xff] }
 0x15d   :  { %2467 = vmatprep.subr.bf16.mxu1 %v2466_v40  ;;  %v685_v32 = vcombine.high %v3615_v25, %v3615_v25  ;;  %v2482_v33 = vpack.c.bf16 %v365_v24, %v361_v23  ;;  %v364_v34 = vld [vmem:[#allocation5 + $0x330] sm:$0xff]  ;;  %v367_v35 = vld [vmem:[#allocation5 + $0x348] sm:$0xff]  ;;  %v369_v37 = vld [vmem:[#allocation5 + $0x358] sm:$0xff]  ;;  %v2292_v39 = vpack.c.bf16 %v362_v30, %v358_v29  ;;  %v3622_v22 = vrot.slane %v670_v8, %v3606_v11 }
 0x15e   :  { %v371_v36 = vld [vmem:[#allocation5 + $0x368] sm:$0xff]  ;;  %v373_v38 = vld [vmem:[#allocation5 + $0x378] sm:$0xff]  ;;  %v2484_v40 = vpack.c.bf16 %v364_v34, %v360_v31  ;;  %v366_v42 = vld [vmem:[#allocation5 + $0x340] sm:$0xff] }
 0x15f   :  { %2277 = vmatpush1.bf16.msra.mxu0 %v2276_v49  ;;  %765 = vmatprep.mubr.f32.mxu0 %v685_v32  ;;  %v2294_v41 = vpack.c.bf16 %v371_v36, %v367_v35  ;;  %v370_v43 = vld [vmem:[#allocation5 + $0x360] sm:$0xff]  ;;  %v368_v44 = vld [vmem:[#allocation5 + $0x350] sm:$0xff]  ;;  %v2486_v45 = vpack.c.bf16 %v373_v38, %v369_v37  ;;  %v375_v47 = vld [vmem:[#allocation5 + $0x388] sm:$0xff]  ;;  %v686_v11 = vcombine.high %v3622_v22, %v3622_v22 }
 0x160   :  { %2469 = vmatpush1.bf16.msra.mxu1 %v2468_v50  ;;  %2279 = vmatprep.subr.bf16.mxu0 %v2278_v51  ;;  %v372_v46 = vld [vmem:[#allocation5 + $0x370] sm:$0xff]  ;;  %v379_v48 = vld [vmem:[#allocation5 + $0x3a8] sm:$0xff]  ;;  %v377_v49 = vld [vmem:[#allocation5 + $0x398] sm:$0xff]  ;;  %v2296_v51 = vpack.c.bf16 %v370_v43, %v366_v42 }
 0x161   :  { %2471 = vmatprep.subr.bf16.mxu1 %v2470_v55  ;;  %978 = vmatprep.mubr.f32.mxu1 %v685_v32  ;;  %v381_v50 = vld [vmem:[#allocation5 + $0x3b8] sm:$0xff]  ;;  %v2488_v52 = vpack.c.bf16 %v372_v46, %v368_v44  ;;  %v2298_v53 = vpack.c.bf16 %v379_v48, %v375_v47  ;;  %v374_v54 = vld [vmem:[#allocation5 + $0x380] sm:$0xff]  ;;  %v376_v56 = vld [vmem:[#allocation5 + $0x390] sm:$0xff] }
 0x162   :  { %v378_v55 = vld [vmem:[#allocation5 + $0x3a0] sm:$0xff]  ;;  %v2490_v57 = vpack.c.bf16 %v381_v50, %v377_v49  ;;  %v380_v58 = vld [vmem:[#allocation5 + $0x3b0] sm:$0xff]  ;;  %v383_v59 = vld [vmem:[#allocation5 + $0x3c8] sm:$0xff] }
 0x163   :  { %2281 = vmatpush1.bf16.msra.mxu0 %v2280_v63  ;;  %v387_v60 = vld [vmem:[#allocation5 + $0x3e8] sm:$0xff]  ;;  %v385_v62 = vld [vmem:[#allocation5 + $0x3d8] sm:$0xff]  ;;  %v382_v3 = vld [vmem:[#allocation5 + $0x3c0] sm:$0xff] }
 0x164   :  { %2473 = vmatpush1.bf16.msra.mxu1 %v2472_v0  ;;  %2283 = vmatprep.subr.bf16.mxu0 %v2282_v1  ;;  %v389_v63 = vld [vmem:[#allocation5 + $0x3f8] sm:$0xff]  ;;  %v2300_v0 = vpack.c.bf16 %v378_v55, %v374_v54  ;;  %v2492_v1 = vpack.c.bf16 %v380_v58, %v376_v56  ;;  %v2302_v2 = vpack.c.bf16 %v387_v60, %v383_v59  ;;  %v386_v4 = vld [vmem:[#allocation5 + $0x3e0] sm:$0xff]  ;;  %v388_v7 = vld [vmem:[#allocation5 + $0x3f0] sm:$0xff] }
 0x165   :  { %2475 = vmatprep.subr.bf16.mxu1 %v2474_v5  ;;  %v384_v5 = vld [vmem:[#allocation5 + $0x3d0] sm:$0xff]  ;;  %v2494_v6 = vpack.c.bf16 %v389_v63, %v385_v62  ;;  %v391_v9 = vld [vmem:[#allocation5 + $0x408] sm:$0xff]  ;;  %v397_v13 = vld [vmem:[#allocation5 + $0x438] sm:$0xff] }
 0x166   :  { %v395_v10 = vld [vmem:[#allocation5 + $0x428] sm:$0xff]  ;;  %v390_v17 = vld [vmem:[#allocation5 + $0x400] sm:$0xff]  ;;  %v396_v21 = vld [vmem:[#allocation5 + $0x430] sm:$0xff] }
 0x167   :  { %2285 = vmatpush1.bf16.msra.mxu0 %v2284_v12  ;;  %v393_v12 = vld [vmem:[#allocation5 + $0x418] sm:$0xff]  ;;  %v2306_v16 = vpack.c.bf16 %v395_v10, %v391_v9  ;;  %v394_v18 = vld [vmem:[#allocation5 + $0x420] sm:$0xff]  ;;  %v399_v23 = vld [vmem:[#allocation5 + $0x448] sm:$0xff] }
 0x168   :  { %2477 = vmatpush1.bf16.msra.mxu1 %v2476_v14  ;;  %2287 = vmatprep.subr.bf16.mxu0 %v2286_v15  ;;  %v2304_v14 = vpack.c.bf16 %v386_v4, %v382_v3  ;;  %v2496_v15 = vpack.c.bf16 %v388_v7, %v384_v5  ;;  %v2498_v20 = vpack.c.bf16 %v397_v13, %v393_v12  ;;  %v403_v24 = vld [vmem:[#allocation5 + $0x468] sm:$0xff]  ;;  %v398_v31 = vld [vmem:[#allocation5 + $0x440] sm:$0xff]  ;;  %v404_v35 = vld [vmem:[#allocation5 + $0x470] sm:$0xff] }
 0x169   :  { %2479 = vmatprep.subr.bf16.mxu1 %v2478_v19  ;;  %v392_v19 = vld [vmem:[#allocation5 + $0x410] sm:$0xff]  ;;  %v2310_v30 = vpack.c.bf16 %v403_v24, %v399_v23  ;;  %v402_v32 = vld [vmem:[#allocation5 + $0x460] sm:$0xff]  ;;  %v407_v36 = vld [vmem:[#allocation5 + $0x488] sm:$0xff] }
 0x16a   :  { %v2500_v29 = vpack.c.bf16 %v396_v21, %v392_v19  ;;  %v411_v37 = vld [vmem:[#allocation5 + $0x4a8] sm:$0xff]  ;;  %v409_v38 = vld [vmem:[#allocation5 + $0x498] sm:$0xff]  ;;  %v406_v43 = vld [vmem:[#allocation5 + $0x480] sm:$0xff] }
 0x16b   :  { %2289 = vmatpush1.bf16.msra.mxu0 %v2288_v26  ;;  %v401_v26 = vld [vmem:[#allocation5 + $0x458] sm:$0xff]  ;;  %v2314_v42 = vpack.c.bf16 %v411_v37, %v407_v36  ;;  %v410_v44 = vld [vmem:[#allocation5 + $0x4a0] sm:$0xff]  ;;  %v412_v47 = vld [vmem:[#allocation5 + $0x4b0] sm:$0xff] }
 0x16c   :  { %2481 = vmatpush1.bf16.msra.mxu1 %v2480_v27  ;;  %2291 = vmatprep.subr.bf16.mxu0 %v2290_v28  ;;  %v405_v27 = vld [vmem:[#allocation5 + $0x478] sm:$0xff]  ;;  %v2308_v28 = vpack.c.bf16 %v394_v18, %v390_v17  ;;  %v415_v48 = vld [vmem:[#allocation5 + $0x4c8] sm:$0xff]  ;;  %v414_v54 = vld [vmem:[#allocation5 + $0x4c0] sm:$0xff] }
 0x16d   :  { %2483 = vmatprep.subr.bf16.mxu1 %v2482_v33  ;;  %v400_v33 = vld [vmem:[#allocation5 + $0x450] sm:$0xff]  ;;  %v2502_v34 = vpack.c.bf16 %v405_v27, %v401_v26  ;;  %v419_v49 = vld [vmem:[#allocation5 + $0x4e8] sm:$0xff]  ;;  %v417_v50 = vld [vmem:[#allocation5 + $0x4d8] sm:$0xff] }
 0x16e   :  { %v418_v55 = vld [vmem:[#allocation5 + $0x4e0] sm:$0xff]  ;;  %v416_v56 = vld [vmem:[#allocation5 + $0x4d0] sm:$0xff]  ;;  %v423_v59 = vld [vmem:[#allocation5 + $0x508] sm:$0xff] }
 0x16f   :  { %2293 = vmatpush1.bf16.msra.mxu0 %v2292_v39  ;;  %v413_v39 = vld [vmem:[#allocation5 + $0x4b8] sm:$0xff]  ;;  %v420_v58 = vld [vmem:[#allocation5 + $0x4f0] sm:$0xff]  ;;  %v427_v60 = vld [vmem:[#allocation5 + $0x528] sm:$0xff] }
 0x170   :  { %2485 = vmatpush1.bf16.msra.mxu1 %v2484_v40  ;;  %2295 = vmatprep.subr.bf16.mxu0 %v2294_v41  ;;  %v2312_v40 = vpack.c.bf16 %v402_v32, %v398_v31  ;;  %v2504_v41 = vpack.c.bf16 %v404_v35, %v400_v33  ;;  %v2506_v46 = vpack.c.bf16 %v413_v39, %v409_v38  ;;  %v425_v62 = vld [vmem:[#allocation5 + $0x518] sm:$0xff]  ;;  %v422_v3 = vld [vmem:[#allocation5 + $0x500] sm:$0xff]  ;;  %v424_v5 = vld [vmem:[#allocation5 + $0x510] sm:$0xff] }
 0x171   :  { %2487 = vmatprep.subr.bf16.mxu1 %v2486_v45  ;;  %v408_v45 = vld [vmem:[#allocation5 + $0x490] sm:$0xff]  ;;  %v429_v63 = vld [vmem:[#allocation5 + $0x538] sm:$0xff]  ;;  %v426_v4 = vld [vmem:[#allocation5 + $0x520] sm:$0xff] }
 0x172   :  { %v428_v7 = vld [vmem:[#allocation5 + $0x530] sm:$0xff]  ;;  %v431_v8 = vld [vmem:[#allocation5 + $0x548] sm:$0xff]  ;;  %v433_v10 = vld [vmem:[#allocation5 + $0x558] sm:$0xff]  ;;  %v2324_v13 = vpack.c.bf16 %v426_v4, %v422_v3 }
 0x173   :  { %2297 = vmatpush1.bf16.msra.mxu0 %v2296_v51  ;;  %v421_v51 = vld [vmem:[#allocation5 + $0x4f8] sm:$0xff]  ;;  %v435_v9 = vld [vmem:[#allocation5 + $0x568] sm:$0xff]  ;;  %v434_v17 = vld [vmem:[#allocation5 + $0x560] sm:$0xff] }
 0x174   :  { %2489 = vmatpush1.bf16.msra.mxu1 %v2488_v52  ;;  %2299 = vmatprep.subr.bf16.mxu0 %v2298_v53  ;;  %v2316_v52 = vpack.c.bf16 %v410_v44, %v406_v43  ;;  %v2318_v53 = vpack.c.bf16 %v419_v49, %v415_v48  ;;  %v437_v12 = vld [vmem:[#allocation5 + $0x578] sm:$0xff]  ;;  %v432_v18 = vld [vmem:[#allocation5 + $0x550] sm:$0xff]  ;;  %v439_v21 = vld [vmem:[#allocation5 + $0x588] sm:$0xff] }
 0x175   :  { %2491 = vmatprep.subr.bf16.mxu1 %v2490_v57  ;;  %v2510_v57 = vpack.c.bf16 %v421_v51, %v417_v50  ;;  %v2518_v19 = vpack.c.bf16 %v437_v12, %v433_v10  ;;  %v443_v23 = vld [vmem:[#allocation5 + $0x5a8] sm:$0xff]  ;;  %v441_v24 = vld [vmem:[#allocation5 + $0x598] sm:$0xff]  ;;  %v442_v31 = vld [vmem:[#allocation5 + $0x5a0] sm:$0xff] }
 0x176   :  { %v445_v26 = vld [vmem:[#allocation5 + $0x5b8] sm:$0xff]  ;;  %v440_v32 = vld [vmem:[#allocation5 + $0x590] sm:$0xff]  ;;  %v447_v35 = vld [vmem:[#allocation5 + $0x5c8] sm:$0xff] }
 0x177   :  { %2301 = vmatpush1.bf16.msra.mxu0 %v2300_v0  ;;  %v2320_v0 = vpack.c.bf16 %v418_v55, %v414_v54  ;;  %v2522_v33 = vpack.c.bf16 %v445_v26, %v441_v24  ;;  %v451_v36 = vld [vmem:[#allocation5 + $0x5e8] sm:$0xff]  ;;  %v449_v37 = vld [vmem:[#allocation5 + $0x5d8] sm:$0xff]  ;;  %v448_v43 = vld [vmem:[#allocation5 + $0x5d0] sm:$0xff] }
 0x178   :  { %2493 = vmatpush1.bf16.msra.mxu1 %v2492_v1  ;;  %2303 = vmatprep.subr.bf16.mxu0 %v2302_v2  ;;  %v2512_v1 = vpack.c.bf16 %v420_v58, %v416_v56  ;;  %v2322_v2 = vpack.c.bf16 %v427_v60, %v423_v59  ;;  %v457_v48 = vld [vmem:[#allocation5 + $0x618] sm:$0xff]  ;;  %v456_v54 = vld [vmem:[#allocation5 + $0x610] sm:$0xff]  ;;  %v467_v58 = vld [vmem:[#allocation5 + $0x668] sm:$0xff] }
 0x179   :  { %2495 = vmatprep.subr.bf16.mxu1 %v2494_v6  ;;  %v2514_v6 = vpack.c.bf16 %v429_v63, %v425_v62  ;;  %v461_v49 = vld [vmem:[#allocation5 + $0x638] sm:$0xff]  ;;  %v460_v56 = vld [vmem:[#allocation5 + $0x630] sm:$0xff] }
 0x17a   :  { %v2530_v55 = vpack.c.bf16 %v461_v49, %v457_v48  ;;  %v465_v59 = vld [vmem:[#allocation5 + $0x658] sm:$0xff]  ;;  %v2532_v63 = vpack.c.bf16 %v460_v56, %v456_v54  ;;  %v464_v3 = vld [vmem:[#allocation5 + $0x650] sm:$0xff]  ;;  %v507_v56 = vld [vmem:[#allocation5 + $0x7a8] sm:$0xff] }
 0x17b   :  { %2305 = vmatpush1.bf16.msra.mxu0 %v2304_v14  ;;  %v2516_v14 = vpack.c.bf16 %v428_v7, %v424_v5  ;;  %v469_v60 = vld [vmem:[#allocation5 + $0x678] sm:$0xff]  ;;  %v468_v5 = vld [vmem:[#allocation5 + $0x670] sm:$0xff]  ;;  %v475_v7 = vld [vmem:[#allocation5 + $0x6a8] sm:$0xff] }
 0x17c   :  { %2497 = vmatpush1.bf16.msra.mxu1 %v2496_v15  ;;  %2307 = vmatprep.subr.bf16.mxu0 %v2306_v16  ;;  %v2326_v15 = vpack.c.bf16 %v435_v9, %v431_v8  ;;  %v430_v16 = vld [vmem:[#allocation5 + $0x540] sm:$0xff]  ;;  %v2534_v4 = vpack.c.bf16 %v469_v60, %v465_v59  ;;  %v473_v8 = vld [vmem:[#allocation5 + $0x698] sm:$0xff]  ;;  %v2536_v12 = vpack.c.bf16 %v468_v5, %v464_v3  ;;  %v500_v54 = vld [vmem:[#allocation5 + $0x770] sm:$0xff] }
 0x17d   :  { %2499 = vmatprep.subr.bf16.mxu1 %v2498_v20  ;;  %v436_v20 = vld [vmem:[#allocation5 + $0x570] sm:$0xff]  ;;  %v2328_v27 = vpack.c.bf16 %v434_v17, %v430_v16  ;;  %v477_v9 = vld [vmem:[#allocation5 + $0x6b8] sm:$0xff]  ;;  %v515_v5 = vld [vmem:[#allocation5 + $0x7e8] sm:$0xff] }
 0x17e   :  { %766 = vmatmul.mubr.f32.vlgmr.msra.gmra.mrb[0].mxu0 %v3615_v25  ;;  %v472_v16 = vld [vmem:[#allocation5 + $0x690] sm:$0xff]  ;;  %v2538_v17 = vpack.c.bf16 %v477_v9, %v473_v8 }
 0x17f   :  { %2309 = vmatpush1.bf16.msra.mxu0 %v2308_v28  ;;  %979 = vmatmul.mubr.f32.vlgmr.msra.gmra.mrb[0].mxu1 %v3615_v25  ;;  %v2508_v25 = vpack.c.bf16 %v412_v47, %v408_v45  ;;  %v2520_v28 = vpack.c.bf16 %v436_v20, %v432_v18  ;;  %v452_v45 = vld [vmem:[#allocation5 + $0x5f0] sm:$0xff]  ;;  %v459_v47 = vld [vmem:[#allocation5 + $0x628] sm:$0xff] }
 0x180   :  { %2501 = vmatpush1.bf16.msra.mxu1 %v2500_v29  ;;  %2311 = vmatprep.subr.bf16.mxu0 %v2310_v30  ;;  %v2330_v29 = vpack.c.bf16 %v443_v23, %v439_v21  ;;  %v438_v30 = vld [vmem:[#allocation5 + $0x580] sm:$0xff]  ;;  %v2528_v51 = vpack.c.bf16 %v452_v45, %v448_v43  ;;  %v476_v18 = vld [vmem:[#allocation5 + $0x6b0] sm:$0xff]  ;;  %v483_v20 = vld [vmem:[#allocation5 + $0x6e8] sm:$0xff] }
 0x181   :  { %2503 = vmatprep.subr.bf16.mxu1 %v2502_v34  ;;  %836 = vmatprep.mubr.f32.mxu0 %v686_v11  ;;  %v444_v34 = vld [vmem:[#allocation5 + $0x5b0] sm:$0xff]  ;;  %v2332_v38 = vpack.c.bf16 %v442_v31, %v438_v30  ;;  %v481_v21 = vld [vmem:[#allocation5 + $0x6d8] sm:$0xff]  ;;  %v2540_v26 = vpack.c.bf16 %v476_v18, %v472_v16  ;;  %v499_v45 = vld [vmem:[#allocation5 + $0x768] sm:$0xff] }
 0x182   :  { %1049 = vmatprep.mubr.f32.mxu1 %v686_v11  ;;  %v453_v11 = vld [vmem:[#allocation5 + $0x5f8] sm:$0xff]  ;;  %v2524_v39 = vpack.c.bf16 %v444_v34, %v440_v32  ;;  %v480_v30 = vld [vmem:[#allocation5 + $0x6d0] sm:$0xff]  ;;  %v491_v34 = vld [vmem:[#allocation5 + $0x728] sm:$0xff] }
 0x183   :  { %2313 = vmatpush1.bf16.msra.mxu0 %v2312_v40  ;;  %v2334_v40 = vpack.c.bf16 %v451_v36, %v447_v35  ;;  %v2526_v44 = vpack.c.bf16 %v453_v11, %v449_v37  ;;  %v485_v23 = vld [vmem:[#allocation5 + $0x6f8] sm:$0xff]  ;;  %v484_v32 = vld [vmem:[#allocation5 + $0x6f0] sm:$0xff]  ;;  %v523_v18 = vld [vmem:[#allocation5 + $0x828] sm:$0xff] }
 0x184   :  { %2505 = vmatpush1.bf16.msra.mxu1 %v2504_v41  ;;  %2315 = vmatprep.subr.bf16.mxu0 %v2314_v42  ;;  %v446_v41 = vld [vmem:[#allocation5 + $0x5c0] sm:$0xff]  ;;  %v2542_v31 = vpack.c.bf16 %v485_v23, %v481_v21  ;;  %v489_v35 = vld [vmem:[#allocation5 + $0x718] sm:$0xff]  ;;  %v2544_v11 = vpack.c.bf16 %v484_v32, %v480_v30  ;;  %v492_v43 = vld [vmem:[#allocation5 + $0x730] sm:$0xff] }
 0x185   :  { %2507 = vmatprep.subr.bf16.mxu1 %v2506_v46  ;;  %v450_v42 = vld [vmem:[#allocation5 + $0x5e0] sm:$0xff]  ;;  %v455_v46 = vld [vmem:[#allocation5 + $0x608] sm:$0xff]  ;;  %v493_v36 = vld [vmem:[#allocation5 + $0x738] sm:$0xff] }
 0x186   :  { %v2336_v50 = vpack.c.bf16 %v450_v42, %v446_v41  ;;  %v488_v41 = vld [vmem:[#allocation5 + $0x710] sm:$0xff]  ;;  %v2546_v42 = vpack.c.bf16 %v493_v36, %v489_v35  ;;  %v531_v32 = vld [vmem:[#allocation5 + $0x868] sm:$0xff] }
 0x187   :  { %2317 = vmatpush1.bf16.msra.mxu0 %v2316_v52  ;;  %v2338_v52 = vpack.c.bf16 %v459_v47, %v455_v46  ;;  %v497_v46 = vld [vmem:[#allocation5 + $0x758] sm:$0xff]  ;;  %v2548_v49 = vpack.c.bf16 %v492_v43, %v488_v41  ;;  %v508_v3 = vld [vmem:[#allocation5 + $0x7b0] sm:$0xff]  ;;  %v3631_v36 = vld.sshfl [vmem:[%s3798_s6 + $0x8] sm:$0x33 pattern:$0x76325410] }
 0x188   :  { %2509 = vmatpush1.bf16.msra.mxu1 %v2508_v25  ;;  %2319 = vmatprep.subr.bf16.mxu0 %v2318_v53  ;;  %v454_v25 = vld [vmem:[#allocation5 + $0x600] sm:$0xff]  ;;  %v501_v47 = vld [vmem:[#allocation5 + $0x778] sm:$0xff]  ;;  %v516_v16 = vld [vmem:[#allocation5 + $0x7f0] sm:$0xff] }
 0x189   :  { %2511 = vmatprep.subr.bf16.mxu1 %v2510_v57  ;;  %v458_v53 = vld [vmem:[#allocation5 + $0x620] sm:$0xff]  ;;  %v463_v57 = vld [vmem:[#allocation5 + $0x648] sm:$0xff]  ;;  %v524_v30 = vld [vmem:[#allocation5 + $0x830] sm:$0xff] }
 0x18a   :  { %v2340_v62 = vpack.c.bf16 %v458_v53, %v454_v25  ;;  %v496_v25 = vld [vmem:[#allocation5 + $0x750] sm:$0xff]  ;;  %v2550_v53 = vpack.c.bf16 %v501_v47, %v497_v46  ;;  %v535_v43 = vld [vmem:[#allocation5 + $0x888] sm:$0xff]  ;;  %v537_v46 = vld [vmem:[#allocation5 + $0x898] sm:$0xff] }
 0x18b   :  { %2321 = vmatpush1.bf16.msra.mxu0 %v2320_v0  ;;  %v2342_v0 = vpack.c.bf16 %v467_v58, %v463_v57  ;;  %v505_v57 = vld [vmem:[#allocation5 + $0x798] sm:$0xff]  ;;  %v2552_v60 = vpack.c.bf16 %v500_v54, %v496_v25  ;;  %v536_v25 = vld [vmem:[#allocation5 + $0x890] sm:$0xff] }
 0x18c   :  { %2513 = vmatpush1.bf16.msra.mxu1 %v2512_v1  ;;  %2323 = vmatprep.subr.bf16.mxu0 %v2322_v2  ;;  %v462_v1 = vld [vmem:[#allocation5 + $0x640] sm:$0xff]  ;;  %v509_v58 = vld [vmem:[#allocation5 + $0x7b8] sm:$0xff]  ;;  %v540_v54 = vld [vmem:[#allocation5 + $0x8b0] sm:$0xff] }
 0x18d   :  { %2515 = vmatprep.subr.bf16.mxu1 %v2514_v6  ;;  %v466_v2 = vld [vmem:[#allocation5 + $0x660] sm:$0xff]  ;;  %v471_v6 = vld [vmem:[#allocation5 + $0x688] sm:$0xff]  ;;  %v541_v47 = vld [vmem:[#allocation5 + $0x8b8] sm:$0xff] }
 0x18e   :  { %v2344_v10 = vpack.c.bf16 %v466_v2, %v462_v1  ;;  %v504_v1 = vld [vmem:[#allocation5 + $0x790] sm:$0xff]  ;;  %v2554_v2 = vpack.c.bf16 %v509_v58, %v505_v57  ;;  %v545_v57 = vld [vmem:[#allocation5 + $0x8d8] sm:$0xff] }
 0x18f   :  { %2325 = vmatpush1.bf16.msra.mxu0 %v2324_v13  ;;  %v2346_v13 = vpack.c.bf16 %v475_v7, %v471_v6  ;;  %v513_v6 = vld [vmem:[#allocation5 + $0x7d8] sm:$0xff]  ;;  %v2556_v9 = vpack.c.bf16 %v508_v3, %v504_v1  ;;  %v551_v3 = vld [vmem:[#allocation5 + $0x908] sm:$0xff] }
 0x190   :  { %2517 = vmatpush1.bf16.msra.mxu1 %v2516_v14  ;;  %2327 = vmatprep.subr.bf16.mxu0 %v2326_v15  ;;  %v470_v14 = vld [vmem:[#allocation5 + $0x680] sm:$0xff]  ;;  %v517_v7 = vld [vmem:[#allocation5 + $0x7f8] sm:$0xff] }
 0x191   :  { %2519 = vmatprep.subr.bf16.mxu1 %v2518_v19  ;;  %v474_v15 = vld [vmem:[#allocation5 + $0x6a0] sm:$0xff]  ;;  %v479_v19 = vld [vmem:[#allocation5 + $0x6c8] sm:$0xff]  ;;  %v549_v58 = vld [vmem:[#allocation5 + $0x8f8] sm:$0xff] }
 0x192   :  { %v2348_v24 = vpack.c.bf16 %v474_v15, %v470_v14  ;;  %v512_v14 = vld [vmem:[#allocation5 + $0x7d0] sm:$0xff]  ;;  %v2558_v15 = vpack.c.bf16 %v517_v7, %v513_v6  ;;  %v2574_v1 = vpack.c.bf16 %v549_v58, %v545_v57  ;;  %v557_v6 = vld [vmem:[#allocation5 + $0x938] sm:$0xff] }
 0x193   :  { %2329 = vmatpush1.bf16.msra.mxu0 %v2328_v27  ;;  %v2350_v27 = vpack.c.bf16 %v483_v20, %v479_v19  ;;  %v521_v19 = vld [vmem:[#allocation5 + $0x818] sm:$0xff]  ;;  %v2560_v23 = vpack.c.bf16 %v516_v16, %v512_v14  ;;  %v559_v16 = vld [vmem:[#allocation5 + $0x948] sm:$0xff] }
 0x194   :  { %2521 = vmatpush1.bf16.msra.mxu1 %v2520_v28  ;;  %2331 = vmatprep.subr.bf16.mxu0 %v2330_v29  ;;  %v478_v28 = vld [vmem:[#allocation5 + $0x6c0] sm:$0xff]  ;;  %v525_v20 = vld [vmem:[#allocation5 + $0x838] sm:$0xff] }
 0x195   :  { %2523 = vmatprep.subr.bf16.mxu1 %v2522_v33  ;;  %v482_v29 = vld [vmem:[#allocation5 + $0x6e0] sm:$0xff]  ;;  %v487_v33 = vld [vmem:[#allocation5 + $0x708] sm:$0xff] }
 0x196   :  { %v2352_v37 = vpack.c.bf16 %v482_v29, %v478_v28  ;;  %v520_v28 = vld [vmem:[#allocation5 + $0x810] sm:$0xff]  ;;  %v2562_v29 = vpack.c.bf16 %v525_v20, %v521_v19  ;;  %v565_v19 = vld [vmem:[#allocation5 + $0x978] sm:$0xff] }
 0x197   :  { %2333 = vmatpush1.bf16.msra.mxu0 %v2332_v38  ;;  %v2354_v38 = vpack.c.bf16 %v491_v34, %v487_v33  ;;  %v529_v33 = vld [vmem:[#allocation5 + $0x858] sm:$0xff] }
 0x198   :  { %2525 = vmatpush1.bf16.msra.mxu1 %v2524_v39  ;;  %2335 = vmatprep.subr.bf16.mxu0 %v2334_v40  ;;  %v486_v39 = vld [vmem:[#allocation5 + $0x700] sm:$0xff]  ;;  %v533_v34 = vld [vmem:[#allocation5 + $0x878] sm:$0xff] }
 0x199   :  { %2527 = vmatprep.subr.bf16.mxu1 %v2526_v44  ;;  %v490_v40 = vld [vmem:[#allocation5 + $0x720] sm:$0xff]  ;;  %v495_v44 = vld [vmem:[#allocation5 + $0x748] sm:$0xff]  ;;  %v2566_v41 = vpack.c.bf16 %v533_v34, %v529_v33  ;;  %v573_v33 = vld [vmem:[#allocation5 + $0x9b8] sm:$0xff] }
 0x19a   :  { %v2356_v48 = vpack.c.bf16 %v490_v40, %v486_v39  ;;  %v530_v39 = vld [vmem:[#allocation5 + $0x860] sm:$0xff]  ;;  %v528_v40 = vld [vmem:[#allocation5 + $0x850] sm:$0xff] }
 0x19b   :  { %2337 = vmatpush1.bf16.msra.mxu0 %v2336_v50  ;;  %v2358_v50 = vpack.c.bf16 %v499_v45, %v495_v44  ;;  %v539_v44 = vld [vmem:[#allocation5 + $0x8a8] sm:$0xff]  ;;  %v694_v45 = vcombine.high %v3631_v36, %v3631_v36 }
 0x19c   :  { %2529 = vmatpush1.bf16.msra.mxu1 %v2528_v51  ;;  %2339 = vmatprep.subr.bf16.mxu0 %v2338_v52  ;;  %v494_v51 = vld [vmem:[#allocation5 + $0x740] sm:$0xff] }
 0x19d   :  { %2531 = vmatprep.subr.bf16.mxu1 %v2530_v55  ;;  %v498_v52 = vld [vmem:[#allocation5 + $0x760] sm:$0xff]  ;;  %v503_v55 = vld [vmem:[#allocation5 + $0x788] sm:$0xff] }
 0x19e   :  { %v2360_v59 = vpack.c.bf16 %v498_v52, %v494_v51  ;;  %v534_v51 = vld [vmem:[#allocation5 + $0x880] sm:$0xff] }
 0x19f   :  { %2341 = vmatpush1.bf16.msra.mxu0 %v2340_v62  ;;  %v2362_v62 = vpack.c.bf16 %v507_v56, %v503_v55  ;;  %v538_v52 = vld [vmem:[#allocation5 + $0x8a0] sm:$0xff]  ;;  %v543_v55 = vld [vmem:[#allocation5 + $0x8c8] sm:$0xff] }
 0x1a0   :  { %2533 = vmatpush1.bf16.msra.mxu1 %v2532_v63  ;;  %2343 = vmatprep.subr.bf16.mxu0 %v2342_v0  ;;  %v502_v63 = vld [vmem:[#allocation5 + $0x780] sm:$0xff]  ;;  %v547_v56 = vld [vmem:[#allocation5 + $0x8e8] sm:$0xff] }
 0x1a1   :  { %2535 = vmatprep.subr.bf16.mxu1 %v2534_v4  ;;  %v506_v0 = vld [vmem:[#allocation5 + $0x7a0] sm:$0xff]  ;;  %v511_v4 = vld [vmem:[#allocation5 + $0x7c8] sm:$0xff] }
 0x1a2   :  { %v2364_v8 = vpack.c.bf16 %v506_v0, %v502_v63  ;;  %v546_v63 = vld [vmem:[#allocation5 + $0x8e0] sm:$0xff]  ;;  %v544_v0 = vld [vmem:[#allocation5 + $0x8d0] sm:$0xff] }
 0x1a3   :  { %2345 = vmatpush1.bf16.msra.mxu0 %v2344_v10  ;;  %v2366_v10 = vpack.c.bf16 %v515_v5, %v511_v4  ;;  %v555_v4 = vld [vmem:[#allocation5 + $0x928] sm:$0xff]  ;;  %v553_v5 = vld [vmem:[#allocation5 + $0x918] sm:$0xff] }
 0x1a4   :  { %2537 = vmatpush1.bf16.msra.mxu1 %v2536_v12  ;;  %2347 = vmatprep.subr.bf16.mxu0 %v2346_v13  ;;  %v510_v12 = vld [vmem:[#allocation5 + $0x7c0] sm:$0xff]  ;;  %v2578_v14 = vpack.c.bf16 %v557_v6, %v553_v5 }
 0x1a5   :  { %2539 = vmatprep.subr.bf16.mxu1 %v2538_v17  ;;  %v514_v13 = vld [vmem:[#allocation5 + $0x7e0] sm:$0xff]  ;;  %v519_v17 = vld [vmem:[#allocation5 + $0x808] sm:$0xff] }
 0x1a6   :  { %v2368_v21 = vpack.c.bf16 %v514_v13, %v510_v12  ;;  %v554_v12 = vld [vmem:[#allocation5 + $0x920] sm:$0xff]  ;;  %v552_v13 = vld [vmem:[#allocation5 + $0x910] sm:$0xff] }
 0x1a7   :  { %2349 = vmatpush1.bf16.msra.mxu0 %v2348_v24  ;;  %v2370_v24 = vpack.c.bf16 %v523_v18, %v519_v17  ;;  %v563_v17 = vld [vmem:[#allocation5 + $0x968] sm:$0xff]  ;;  %v561_v18 = vld [vmem:[#allocation5 + $0x958] sm:$0xff] }
 0x1a8   :  { %2541 = vmatpush1.bf16.msra.mxu1 %v2540_v26  ;;  %2351 = vmatprep.subr.bf16.mxu0 %v2350_v27  ;;  %v518_v26 = vld [vmem:[#allocation5 + $0x800] sm:$0xff] }
 0x1a9   :  { %2543 = vmatprep.subr.bf16.mxu1 %v2542_v31  ;;  %v522_v27 = vld [vmem:[#allocation5 + $0x820] sm:$0xff]  ;;  %v527_v31 = vld [vmem:[#allocation5 + $0x848] sm:$0xff] }
 0x1aa   :  { %v2372_v35 = vpack.c.bf16 %v522_v27, %v518_v26  ;;  %v562_v26 = vld [vmem:[#allocation5 + $0x960] sm:$0xff]  ;;  %v560_v27 = vld [vmem:[#allocation5 + $0x950] sm:$0xff] }
 0x1ab   :  { %2353 = vmatpush1.bf16.msra.mxu0 %v2352_v37  ;;  %v2564_v37 = vpack.c.bf16 %v524_v30, %v520_v28  ;;  %v2582_v28 = vpack.c.bf16 %v565_v19, %v561_v18  ;;  %v567_v30 = vld [vmem:[#allocation5 + $0x988] sm:$0xff] }
 0x1ac   :  { %2545 = vmatpush1.bf16.msra.mxu1 %v2544_v11  ;;  %2355 = vmatprep.subr.bf16.mxu0 %v2354_v38  ;;  %v2374_v11 = vpack.c.bf16 %v531_v32, %v527_v31  ;;  %v526_v38 = vld [vmem:[#allocation5 + $0x840] sm:$0xff]  ;;  %v571_v31 = vld [vmem:[#allocation5 + $0x9a8] sm:$0xff]  ;;  %v569_v32 = vld [vmem:[#allocation5 + $0x998] sm:$0xff] }
 0x1ad   :  { %2547 = vmatprep.subr.bf16.mxu1 %v2546_v42  ;;  %v532_v42 = vld [vmem:[#allocation5 + $0x870] sm:$0xff] }
 0x1af   :  { %2357 = vmatpush1.bf16.msra.mxu0 %v2356_v48  ;;  %v2376_v48 = vpack.c.bf16 %v530_v39, %v526_v38  ;;  %v570_v38 = vld [vmem:[#allocation5 + $0x9a0] sm:$0xff]  ;;  %v568_v39 = vld [vmem:[#allocation5 + $0x990] sm:$0xff] }
 0x1b0   :  { %2549 = vmatpush1.bf16.msra.mxu1 %v2548_v49  ;;  %2359 = vmatprep.subr.bf16.mxu0 %v2358_v50  ;;  %v2568_v49 = vpack.c.bf16 %v532_v42, %v528_v40  ;;  %v2378_v50 = vpack.c.bf16 %v539_v44, %v535_v43  ;;  %v2586_v40 = vpack.c.bf16 %v573_v33, %v569_v32  ;;  %v575_v42 = vld [vmem:[#allocation5 + $0x9c8] sm:$0xff]  ;;  %v577_v44 = vld [vmem:[#allocation5 + $0x9d8] sm:$0xff] }
 0x1b1   :  { %2551 = vmatprep.subr.bf16.mxu1 %v2550_v53  ;;  %v2570_v53 = vpack.c.bf16 %v541_v47, %v537_v46  ;;  %v579_v43 = vld [vmem:[#allocation5 + $0x9e8] sm:$0xff] }
 0x1b3   :  { %2361 = vmatpush1.bf16.msra.mxu0 %v2360_v59  ;;  %v2380_v59 = vpack.c.bf16 %v538_v52, %v534_v51  ;;  %v576_v51 = vld [vmem:[#allocation5 + $0x9d0] sm:$0xff] }
 0x1b4   :  { %2553 = vmatpush1.bf16.msra.mxu1 %v2552_v60  ;;  %2363 = vmatprep.subr.bf16.mxu0 %v2362_v62  ;;  %v2382_v60 = vpack.c.bf16 %v547_v56, %v543_v55  ;;  %v542_v62 = vld [vmem:[#allocation5 + $0x8c0] sm:$0xff]  ;;  %v585_v55 = vld [vmem:[#allocation5 + $0xa18] sm:$0xff] }
 0x1b5   :  { %2555 = vmatprep.subr.bf16.mxu1 %v2554_v2  ;;  %v548_v2 = vld [vmem:[#allocation5 + $0x8f0] sm:$0xff]  ;;  %v2384_v7 = vpack.c.bf16 %v546_v63, %v542_v62  ;;  %v589_v56 = vld [vmem:[#allocation5 + $0xa38] sm:$0xff] }
 0x1b6   :  { %v584_v62 = vld [vmem:[#allocation5 + $0xa10] sm:$0xff]  ;;  %v2594_v63 = vpack.c.bf16 %v589_v56, %v585_v55 }
 0x1b7   :  { %2365 = vmatpush1.bf16.msra.mxu0 %v2364_v8  ;;  %v2576_v8 = vpack.c.bf16 %v548_v2, %v544_v0  ;;  %v588_v0 = vld [vmem:[#allocation5 + $0xa30] sm:$0xff]  ;;  %v595_v2 = vld [vmem:[#allocation5 + $0xa68] sm:$0xff] }
 0x1b8   :  { %2557 = vmatpush1.bf16.msra.mxu1 %v2556_v9  ;;  %2367 = vmatprep.subr.bf16.mxu0 %v2366_v10  ;;  %v2386_v9 = vpack.c.bf16 %v555_v4, %v551_v3  ;;  %v550_v10 = vld [vmem:[#allocation5 + $0x900] sm:$0xff]  ;;  %v593_v3 = vld [vmem:[#allocation5 + $0xa58] sm:$0xff]  ;;  %v2596_v6 = vpack.c.bf16 %v588_v0, %v584_v62  ;;  %v628_v62 = vld [vmem:[#allocation5 + $0xb70] sm:$0xff] }
 0x1b9   :  { %2559 = vmatprep.subr.bf16.mxu1 %v2558_v15  ;;  %v556_v15 = vld [vmem:[#allocation5 + $0x930] sm:$0xff]  ;;  %v2388_v20 = vpack.c.bf16 %v554_v12, %v550_v10  ;;  %v597_v4 = vld [vmem:[#allocation5 + $0xa78] sm:$0xff]  ;;  %v635_v0 = vld [vmem:[#allocation5 + $0xba8] sm:$0xff] }
 0x1ba   :  { %v592_v10 = vld [vmem:[#allocation5 + $0xa50] sm:$0xff]  ;;  %v2598_v12 = vpack.c.bf16 %v597_v4, %v593_v3 }
 0x1bb   :  { %2369 = vmatpush1.bf16.msra.mxu0 %v2368_v21  ;;  %v2580_v21 = vpack.c.bf16 %v556_v15, %v552_v13  ;;  %v596_v13 = vld [vmem:[#allocation5 + $0xa70] sm:$0xff]  ;;  %v603_v15 = vld [vmem:[#allocation5 + $0xaa8] sm:$0xff] }
 0x1bc   :  { %2561 = vmatpush1.bf16.msra.mxu1 %v2560_v23  ;;  %2371 = vmatprep.subr.bf16.mxu0 %v2370_v24  ;;  %v2390_v23 = vpack.c.bf16 %v563_v17, %v559_v16  ;;  %v558_v24 = vld [vmem:[#allocation5 + $0x940] sm:$0xff]  ;;  %v601_v16 = vld [vmem:[#allocation5 + $0xa98] sm:$0xff]  ;;  %v2600_v19 = vpack.c.bf16 %v596_v13, %v592_v10  ;;  %v636_v10 = vld [vmem:[#allocation5 + $0xbb0] sm:$0xff] }
 0x1bd   :  { %2563 = vmatprep.subr.bf16.mxu1 %v2562_v29  ;;  %v564_v29 = vld [vmem:[#allocation5 + $0x970] sm:$0xff]  ;;  %v2392_v34 = vpack.c.bf16 %v562_v26, %v558_v24  ;;  %v605_v17 = vld [vmem:[#allocation5 + $0xab8] sm:$0xff]  ;;  %v643_v13 = vld [vmem:[#allocation5 + $0xbe8] sm:$0xff] }
 0x1be   :  { %837 = vmatmul.mubr.f32.vlgmr.msra.gmra.mrb[0].mxu0 %v3622_v22  ;;  %v600_v24 = vld [vmem:[#allocation5 + $0xa90] sm:$0xff]  ;;  %v2602_v26 = vpack.c.bf16 %v605_v17, %v601_v16 }
 0x1bf   :  { %2373 = vmatpush1.bf16.msra.mxu0 %v2372_v35  ;;  %1050 = vmatmul.mubr.f32.vlgmr.msra.gmra.mrb[0].mxu1 %v3622_v22  ;;  %v2572_v22 = vpack.c.bf16 %v540_v54, %v536_v25  ;;  %v2584_v35 = vpack.c.bf16 %v564_v29, %v560_v27  ;;  %v580_v25 = vld [vmem:[#allocation5 + $0x9f0] sm:$0xff]  ;;  %v587_v54 = vld [vmem:[#allocation5 + $0xa28] sm:$0xff] }
 0x1c0   :  { %2565 = vmatpush1.bf16.msra.mxu1 %v2564_v37  ;;  %2375 = vmatprep.subr.bf16.mxu0 %v2374_v11  ;;  %v2394_v37 = vpack.c.bf16 %v571_v31, %v567_v30  ;;  %v566_v11 = vld [vmem:[#allocation5 + $0x980] sm:$0xff]  ;;  %v2592_v58 = vpack.c.bf16 %v580_v25, %v576_v51  ;;  %v604_v27 = vld [vmem:[#allocation5 + $0xab0] sm:$0xff]  ;;  %v611_v29 = vld [vmem:[#allocation5 + $0xae8] sm:$0xff] }
 0x1c1   :  { %2567 = vmatprep.subr.bf16.mxu1 %v2566_v41  ;;  %907 = vmatprep.mubr.f32.mxu0 %v694_v45  ;;  %v572_v41 = vld [vmem:[#allocation5 + $0x9b0] sm:$0xff]  ;;  %v2396_v46 = vpack.c.bf16 %v570_v38, %v566_v11  ;;  %v609_v30 = vld [vmem:[#allocation5 + $0xad8] sm:$0xff]  ;;  %v2604_v33 = vpack.c.bf16 %v604_v27, %v600_v24  ;;  %v627_v25 = vld [vmem:[#allocation5 + $0xb68] sm:$0xff] }
 0x1c2   :  { %1120 = vmatprep.mubr.f32.mxu1 %v694_v45  ;;  %v581_v45 = vld [vmem:[#allocation5 + $0x9f8] sm:$0xff]  ;;  %v2588_v47 = vpack.c.bf16 %v572_v41, %v568_v39  ;;  %v608_v11 = vld [vmem:[#allocation5 + $0xad0] sm:$0xff]  ;;  %v619_v41 = vld [vmem:[#allocation5 + $0xb28] sm:$0xff] }
 0x1c3   :  { %2377 = vmatpush1.bf16.msra.mxu0 %v2376_v48  ;;  %v2398_v48 = vpack.c.bf16 %v579_v43, %v575_v42  ;;  %v2590_v52 = vpack.c.bf16 %v581_v45, %v577_v44  ;;  %v613_v31 = vld [vmem:[#allocation5 + $0xaf8] sm:$0xff]  ;;  %v612_v39 = vld [vmem:[#allocation5 + $0xaf0] sm:$0xff] }
 0x1c4   :  { %2569 = vmatpush1.bf16.msra.mxu1 %v2568_v49  ;;  %2379 = vmatprep.subr.bf16.mxu0 %v2378_v50  ;;  %v574_v49 = vld [vmem:[#allocation5 + $0x9c0] sm:$0xff]  ;;  %v2606_v38 = vpack.c.bf16 %v613_v31, %v609_v30  ;;  %v617_v42 = vld [vmem:[#allocation5 + $0xb18] sm:$0xff]  ;;  %v2608_v45 = vpack.c.bf16 %v612_v39, %v608_v11  ;;  %v620_v51 = vld [vmem:[#allocation5 + $0xb30] sm:$0xff] }
 0x1c5   :  { %2571 = vmatprep.subr.bf16.mxu1 %v2570_v53  ;;  %v578_v50 = vld [vmem:[#allocation5 + $0x9e0] sm:$0xff]  ;;  %v583_v53 = vld [vmem:[#allocation5 + $0xa08] sm:$0xff]  ;;  %v621_v43 = vld [vmem:[#allocation5 + $0xb38] sm:$0xff] }
 0x1c6   :  { %v2400_v57 = vpack.c.bf16 %v578_v50, %v574_v49  ;;  %v616_v49 = vld [vmem:[#allocation5 + $0xb10] sm:$0xff]  ;;  %v2610_v50 = vpack.c.bf16 %v621_v43, %v617_v42  ;;  %v1138_v27 = vld [vmem:[#allocation8 + $0x18] sm:$0xff]  ;;  %v1135_v31 = vld [vmem:[#allocation8] sm:$0xff] }
 0x1c7   :  { %2381 = vmatpush1.bf16.msra.mxu0 %v2380_v59  ;;  %v2402_v59 = vpack.c.bf16 %v587_v54, %v583_v53  ;;  %v625_v53 = vld [vmem:[#allocation5 + $0xb58] sm:$0xff]  ;;  %v2612_v56 = vpack.c.bf16 %v620_v51, %v616_v49  ;;  %v644_v24 = vld [vmem:[#allocation5 + $0xbf0] sm:$0xff]  ;;  %v1139_v11 = vld [vmem:[#allocation8 + $0x20] sm:$0xff] }
 0x1c8   :  { %2573 = vmatpush1.bf16.msra.mxu1 %v2572_v22  ;;  %2383 = vmatprep.subr.bf16.mxu0 %v2382_v60  ;;  %v582_v22 = vld [vmem:[#allocation5 + $0xa00] sm:$0xff]  ;;  %v629_v54 = vld [vmem:[#allocation5 + $0xb78] sm:$0xff]  ;;  %v1144_v39 = vld [vmem:[#allocation8 + $0x48] sm:$0xff] }
 0x1c9   :  { %2575 = vmatprep.subr.bf16.mxu1 %v2574_v1  ;;  %v586_v60 = vld [vmem:[#allocation5 + $0xa20] sm:$0xff]  ;;  %v591_v1 = vld [vmem:[#allocation5 + $0xa48] sm:$0xff] }
 0x1ca   :  { %v2404_v5 = vpack.c.bf16 %v586_v60, %v582_v22  ;;  %v624_v22 = vld [vmem:[#allocation5 + $0xb50] sm:$0xff]  ;;  %v2614_v60 = vpack.c.bf16 %v629_v54, %v625_v53  ;;  %v1143_v43 = vld [vmem:[#allocation8 + $0x40] sm:$0xff] }
 0x1cb   :  { %2385 = vmatpush1.bf16.msra.mxu0 %v2384_v7  ;;  %v2406_v7 = vpack.c.bf16 %v595_v2, %v591_v1  ;;  %v633_v1 = vld [vmem:[#allocation5 + $0xb98] sm:$0xff]  ;;  %v2616_v4 = vpack.c.bf16 %v628_v62, %v624_v22  ;;  %v1147_v49 = vld [vmem:[#allocation8 + $0x60] sm:$0xff]  ;;  %v1152_v51 = vld [vmem:[#allocation8 + $0x88] sm:$0xff] }
 0x1cc   :  { %2577 = vmatpush1.bf16.msra.mxu1 %v2576_v8  ;;  %2387 = vmatprep.subr.bf16.mxu0 %v2386_v9  ;;  %v590_v8 = vld [vmem:[#allocation5 + $0xa40] sm:$0xff]  ;;  %v637_v2 = vld [vmem:[#allocation5 + $0xbb8] sm:$0xff] }
 0x1cd   :  { %2579 = vmatprep.subr.bf16.mxu1 %v2578_v14  ;;  %v594_v9 = vld [vmem:[#allocation5 + $0xa60] sm:$0xff]  ;;  %v599_v14 = vld [vmem:[#allocation5 + $0xa88] sm:$0xff]  ;;  %v1153_v54 = vld [vmem:[#allocation8 + $0x90] sm:$0xff] }
 0x1ce   :  { %v2408_v18 = vpack.c.bf16 %v594_v9, %v590_v8  ;;  %v632_v8 = vld [vmem:[#allocation5 + $0xb90] sm:$0xff]  ;;  %v2618_v9 = vpack.c.bf16 %v637_v2, %v633_v1  ;;  %v1151_v53 = vld [vmem:[#allocation8 + $0x80] sm:$0xff]  ;;  %v1162_v62 = vld [vmem:[#allocation8 + $0xd8] sm:$0xff] }
 0x1cf   :  { %2389 = vmatpush1.bf16.msra.mxu0 %v2388_v20  ;;  %v2410_v20 = vpack.c.bf16 %v603_v15, %v599_v14  ;;  %v641_v14 = vld [vmem:[#allocation5 + $0xbd8] sm:$0xff]  ;;  %v2620_v17 = vpack.c.bf16 %v636_v10, %v632_v8  ;;  %v1159_v1 = vld [vmem:[#allocation8 + $0xc0] sm:$0xff] }
 0x1d0   :  { %2581 = vmatpush1.bf16.msra.mxu1 %v2580_v21  ;;  %2391 = vmatprep.subr.bf16.mxu0 %v2390_v23  ;;  %v598_v21 = vld [vmem:[#allocation5 + $0xa80] sm:$0xff]  ;;  %v645_v15 = vld [vmem:[#allocation5 + $0xbf8] sm:$0xff] }
 0x1d1   :  { %2583 = vmatprep.subr.bf16.mxu1 %v2582_v28  ;;  %v602_v23 = vld [vmem:[#allocation5 + $0xaa0] sm:$0xff]  ;;  %v607_v28 = vld [vmem:[#allocation5 + $0xac8] sm:$0xff]  ;;  %v1157_v22 = vld [vmem:[#allocation8 + $0xb0] sm:$0xff] }
 0x1d2   :  { %v2412_v32 = vpack.c.bf16 %v602_v23, %v598_v21  ;;  %v640_v21 = vld [vmem:[#allocation5 + $0xbd0] sm:$0xff]  ;;  %v2622_v23 = vpack.c.bf16 %v645_v15, %v641_v14  ;;  %v1170_v10 = vld [vmem:[#allocation8 + $0x118] sm:$0xff]  ;;  %v1167_v14 = vld [vmem:[#allocation8 + $0x100] sm:$0xff] }
 0x1d3   :  { %2393 = vmatpush1.bf16.msra.mxu0 %v2392_v34  ;;  %v2414_v34 = vpack.c.bf16 %v611_v29, %v607_v28  ;;  %v2624_v29 = vpack.c.bf16 %v644_v24, %v640_v21  ;;  %v1161_v2 = vld [vmem:[#allocation8 + $0xd0] sm:$0xff]  ;;  %v1178_v24 = vld [vmem:[#allocation8 + $0x158] sm:$0xff] }
 0x1d4   :  { %2585 = vmatpush1.bf16.msra.mxu1 %v2584_v35  ;;  %2395 = vmatprep.subr.bf16.mxu0 %v2394_v37  ;;  %v606_v35 = vld [vmem:[#allocation5 + $0xac0] sm:$0xff]  ;;  %v1165_v8 = vld [vmem:[#allocation8 + $0xf0] sm:$0xff] }
 0x1d5   :  { %2587 = vmatprep.subr.bf16.mxu1 %v2586_v40  ;;  %v610_v37 = vld [vmem:[#allocation5 + $0xae0] sm:$0xff]  ;;  %v615_v40 = vld [vmem:[#allocation5 + $0xb08] sm:$0xff]  ;;  %v1169_v15 = vld [vmem:[#allocation8 + $0x110] sm:$0xff] }
 0x1d6   :  { %v2416_v44 = vpack.c.bf16 %v610_v37, %v606_v35  ;;  %v1173_v21 = vld [vmem:[#allocation8 + $0x130] sm:$0xff] }
 0x1d7   :  { %2397 = vmatpush1.bf16.msra.mxu0 %v2396_v46  ;;  %v2418_v46 = vpack.c.bf16 %v619_v41, %v615_v40  ;;  %v1146_v40 = vld [vmem:[#allocation8 + $0x58] sm:$0xff] }
 0x1d8   :  { %2589 = vmatpush1.bf16.msra.mxu1 %v2588_v47  ;;  %2399 = vmatprep.subr.bf16.mxu0 %v2398_v48  ;;  %v614_v47 = vld [vmem:[#allocation5 + $0xb00] sm:$0xff]  ;;  %v2634_v42 = vpack.c.bf16 %v1146_v40, %v1144_v39 }
 0x1d9   :  { %2591 = vmatprep.subr.bf16.mxu1 %v2590_v52  ;;  %v618_v48 = vld [vmem:[#allocation5 + $0xb20] sm:$0xff]  ;;  %v623_v52 = vld [vmem:[#allocation5 + $0xb48] sm:$0xff] }
 0x1da   :  { %v2420_v55 = vpack.c.bf16 %v618_v48, %v614_v47  ;;  %v1183_v40 = vld [vmem:[#allocation8 + $0x180] sm:$0xff] }
 0x1db   :  { %2401 = vmatpush1.bf16.msra.mxu0 %v2400_v57  ;;  %v2422_v57 = vpack.c.bf16 %v627_v25, %v623_v52  ;;  %v1154_v52 = vld [vmem:[#allocation8 + $0x98] sm:$0xff] }
 0x1dc   :  { %2593 = vmatpush1.bf16.msra.mxu1 %v2592_v58  ;;  %2403 = vmatprep.subr.bf16.mxu0 %v2402_v59  ;;  %v622_v58 = vld [vmem:[#allocation5 + $0xb40] sm:$0xff] }
 0x1dd   :  { %2595 = vmatprep.subr.bf16.mxu1 %v2594_v63  ;;  %v626_v59 = vld [vmem:[#allocation5 + $0xb60] sm:$0xff]  ;;  %v631_v63 = vld [vmem:[#allocation5 + $0xb88] sm:$0xff] }
 0x1de   :  { %v2424_v3 = vpack.c.bf16 %v626_v59, %v622_v58  ;;  %v1155_v59 = vld [vmem:[#allocation8 + $0xa0] sm:$0xff] }
 0x1df   :  { %2405 = vmatpush1.bf16.msra.mxu0 %v2404_v5  ;;  %v2426_v5 = vpack.c.bf16 %v635_v0, %v631_v63  ;;  %v2648_v63 = vpack.c.bf16 %v1157_v22, %v1155_v59  ;;  %v1200_v59 = vld [vmem:[#allocation8 + $0x208] sm:$0xff]  ;;  %v1202_v22 = vld [vmem:[#allocation8 + $0x218] sm:$0xff] }
 0x1e0   :  { %2597 = vmatpush1.bf16.msra.mxu1 %v2596_v6  ;;  %2407 = vmatprep.subr.bf16.mxu0 %v2406_v7  ;;  %v630_v6 = vld [vmem:[#allocation5 + $0xb80] sm:$0xff] }
 0x1e1   :  { %2599 = vmatprep.subr.bf16.mxu1 %v2598_v12  ;;  %v634_v7 = vld [vmem:[#allocation5 + $0xba0] sm:$0xff]  ;;  %v639_v12 = vld [vmem:[#allocation5 + $0xbc8] sm:$0xff] }
 0x1e2   :  { %v2428_v16 = vpack.c.bf16 %v634_v7, %v630_v6  ;;  %v1163_v7 = vld [vmem:[#allocation8 + $0xe0] sm:$0xff] }
 0x1e3   :  { %2409 = vmatpush1.bf16.msra.mxu0 %v2408_v18  ;;  %v2430_v18 = vpack.c.bf16 %v643_v13, %v639_v12  ;;  %v2656_v12 = vpack.c.bf16 %v1165_v8, %v1163_v7  ;;  %v1423_v7 = vld [vmem:[#allocation11 + $0x10] sm:$0xff]  ;;  %v1424_v8 = vld [vmem:[#allocation11 + $0x18] sm:$0xff] }
 0x1e4   :  { %2601 = vmatpush1.bf16.msra.mxu1 %v2600_v19  ;;  %2411 = vmatprep.subr.bf16.mxu0 %v2410_v20  ;;  %v638_v19 = vld [vmem:[#allocation5 + $0xbc0] sm:$0xff] }
 0x1e5   :  { %2603 = vmatprep.subr.bf16.mxu1 %v2602_v26  ;;  %v642_v20 = vld [vmem:[#allocation5 + $0xbe0] sm:$0xff]  ;;  %v1136_v26 = vld [vmem:[#allocation8 + $0x8] sm:$0xff] }
 0x1e6   :  { %v2432_v28 = vpack.c.bf16 %v642_v20, %v638_v19  ;;  %v2626_v30 = vpack.c.bf16 %v1138_v27, %v1136_v26  ;;  %v1171_v20 = vld [vmem:[#allocation8 + $0x120] sm:$0xff] }
 0x1e7   :  { %2413 = vmatpush1.bf16.msra.mxu0 %v2412_v32  ;;  %v1137_v32 = vld [vmem:[#allocation8 + $0x10] sm:$0xff]  ;;  %v2664_v26 = vpack.c.bf16 %v1173_v21, %v1171_v20  ;;  %v1428_v21 = vld [vmem:[#allocation11 + $0x38] sm:$0xff] }
 0x1e8   :  { %2605 = vmatpush1.bf16.msra.mxu1 %v2604_v33  ;;  %2415 = vmatprep.subr.bf16.mxu0 %v2414_v34  ;;  %v1140_v33 = vld [vmem:[#allocation8 + $0x28] sm:$0xff]  ;;  %v1142_v34 = vld [vmem:[#allocation8 + $0x38] sm:$0xff]  ;;  %v2628_v35 = vpack.c.bf16 %v1137_v32, %v1135_v31 }
 0x1e9   :  { %2607 = vmatprep.subr.bf16.mxu1 %v2606_v38  ;;  %v2630_v37 = vpack.c.bf16 %v1142_v34, %v1140_v33  ;;  %v1141_v38 = vld [vmem:[#allocation8 + $0x30] sm:$0xff]  ;;  %v1182_v31 = vld [vmem:[#allocation8 + $0x178] sm:$0xff]  ;;  %v1179_v34 = vld [vmem:[#allocation8 + $0x160] sm:$0xff] }
 0x1ea   :  { %v2632_v41 = vpack.c.bf16 %v1141_v38, %v1139_v11  ;;  %v1186_v11 = vld [vmem:[#allocation8 + $0x198] sm:$0xff] }
 0x1eb   :  { %2417 = vmatpush1.bf16.msra.mxu0 %v2416_v44  ;;  %v1145_v44 = vld [vmem:[#allocation8 + $0x50] sm:$0xff] }
 0x1ec   :  { %2609 = vmatpush1.bf16.msra.mxu1 %v2608_v45  ;;  %2419 = vmatprep.subr.bf16.mxu0 %v2418_v46  ;;  %v1148_v45 = vld [vmem:[#allocation8 + $0x68] sm:$0xff]  ;;  %v1150_v46 = vld [vmem:[#allocation8 + $0x78] sm:$0xff]  ;;  %v2636_v47 = vpack.c.bf16 %v1145_v44, %v1143_v43 }
 0x1ed   :  { %2611 = vmatprep.subr.bf16.mxu1 %v2610_v50  ;;  %v2638_v48 = vpack.c.bf16 %v1150_v46, %v1148_v45  ;;  %v1149_v50 = vld [vmem:[#allocation8 + $0x70] sm:$0xff]  ;;  %v1190_v43 = vld [vmem:[#allocation8 + $0x1b8] sm:$0xff]  ;;  %v1187_v46 = vld [vmem:[#allocation8 + $0x1a0] sm:$0xff] }
 0x1ee   :  { %v2640_v25 = vpack.c.bf16 %v1149_v50, %v1147_v49  ;;  %v1192_v49 = vld [vmem:[#allocation8 + $0x1c8] sm:$0xff]  ;;  %v1194_v50 = vld [vmem:[#allocation8 + $0x1d8] sm:$0xff] }
 0x1ef   :  { %2421 = vmatpush1.bf16.msra.mxu0 %v2420_v55  ;;  %v1156_v55 = vld [vmem:[#allocation8 + $0xa8] sm:$0xff]  ;;  %v1427_v20 = vld [vmem:[#allocation11 + $0x30] sm:$0xff] }
 0x1f0   :  { %2613 = vmatpush1.bf16.msra.mxu1 %v2612_v56  ;;  %2423 = vmatprep.subr.bf16.mxu0 %v2422_v57  ;;  %v1158_v56 = vld [vmem:[#allocation8 + $0xb8] sm:$0xff]  ;;  %v2644_v57 = vpack.c.bf16 %v1153_v54, %v1151_v53  ;;  %v1196_v53 = vld [vmem:[#allocation8 + $0x1e8] sm:$0xff] }
 0x1f1   :  { %2615 = vmatprep.subr.bf16.mxu1 %v2614_v60  ;;  %v2646_v58 = vpack.c.bf16 %v1158_v56, %v1156_v55  ;;  %v1160_v60 = vld [vmem:[#allocation8 + $0xc8] sm:$0xff]  ;;  %v1198_v54 = vld [vmem:[#allocation8 + $0x1f8] sm:$0xff]  ;;  %v1195_v56 = vld [vmem:[#allocation8 + $0x1e0] sm:$0xff] }
 0x1f2   :  { %v2650_v0 = vpack.c.bf16 %v1162_v62, %v1160_v60  ;;  %v2686_v55 = vpack.c.bf16 %v1198_v54, %v1196_v53  ;;  %v2690_v60 = vpack.c.bf16 %v1202_v22, %v1200_v59  ;;  %v1437_v62 = vld [vmem:[#allocation11 + $0x80] sm:$0xff]  ;;  %v1206_v54 = vld [vmem:[#allocation8 + $0x238] sm:$0xff] }
 0x1f3   :  { %2425 = vmatpush1.bf16.msra.mxu0 %v2424_v3  ;;  %v1164_v3 = vld [vmem:[#allocation8 + $0xe8] sm:$0xff]  ;;  %v1203_v22 = vld [vmem:[#allocation8 + $0x220] sm:$0xff] }
 0x1f4   :  { %2617 = vmatpush1.bf16.msra.mxu1 %v2616_v4  ;;  %2427 = vmatprep.subr.bf16.mxu0 %v2426_v5  ;;  %v1166_v4 = vld [vmem:[#allocation8 + $0xf8] sm:$0xff]  ;;  %v2652_v5 = vpack.c.bf16 %v1161_v2, %v1159_v1  ;;  %v1422_v2 = vld [vmem:[#allocation11 + $0x8] sm:$0xff] }
 0x1f5   :  { %2619 = vmatprep.subr.bf16.mxu1 %v2618_v9  ;;  %v2654_v6 = vpack.c.bf16 %v1166_v4, %v1164_v3  ;;  %v1168_v9 = vld [vmem:[#allocation8 + $0x108] sm:$0xff]  ;;  %v1439_v3 = vld [vmem:[#allocation11 + $0x90] sm:$0xff]  ;;  %v1440_v4 = vld [vmem:[#allocation11 + $0x98] sm:$0xff] }
 0x1f6   :  { %v2658_v13 = vpack.c.bf16 %v1170_v10, %v1168_v9  ;;  %v1441_v9 = vld [vmem:[#allocation11 + $0xa0] sm:$0xff]  ;;  %v1442_v10 = vld [vmem:[#allocation11 + $0xa8] sm:$0xff] }
 0x1f7   :  { %2429 = vmatpush1.bf16.msra.mxu0 %v2428_v16  ;;  %v1172_v16 = vld [vmem:[#allocation8 + $0x128] sm:$0xff] }
 0x1f8   :  { %2621 = vmatpush1.bf16.msra.mxu1 %v2620_v17  ;;  %2431 = vmatprep.subr.bf16.mxu0 %v2430_v18  ;;  %v1174_v17 = vld [vmem:[#allocation8 + $0x138] sm:$0xff]  ;;  %v2660_v18 = vpack.c.bf16 %v1169_v15, %v1167_v14  ;;  %v1425_v14 = vld [vmem:[#allocation11 + $0x20] sm:$0xff]  ;;  %v1426_v15 = vld [vmem:[#allocation11 + $0x28] sm:$0xff] }
 0x1f9   :  { %2623 = vmatprep.subr.bf16.mxu1 %v2622_v23  ;;  %v2662_v19 = vpack.c.bf16 %v1174_v17, %v1172_v16  ;;  %v1176_v23 = vld [vmem:[#allocation8 + $0x148] sm:$0xff]  ;;  %v1443_v16 = vld [vmem:[#allocation11 + $0xb0] sm:$0xff]  ;;  %v1444_v17 = vld [vmem:[#allocation11 + $0xb8] sm:$0xff] }
 0x1fa   :  { %v2666_v27 = vpack.c.bf16 %v1178_v24, %v1176_v23  ;;  %v1445_v23 = vld [vmem:[#allocation11 + $0xc0] sm:$0xff]  ;;  %v1446_v24 = vld [vmem:[#allocation11 + $0xc8] sm:$0xff] }
 0x1fb   :  { %2433 = vmatpush1.bf16.msra.mxu0 %v2432_v28  ;;  %v1175_v28 = vld [vmem:[#allocation8 + $0x140] sm:$0xff]  ;;  %v1204_v53 = vld [vmem:[#allocation8 + $0x228] sm:$0xff] }
 0x1fc   :  { %2625 = vmatpush1.bf16.msra.mxu1 %v2624_v29  ;;  %2627 = vmatprep.subr.bf16.mxu0 %v2626_v30  ;;  %v1177_v29 = vld [vmem:[#allocation8 + $0x150] sm:$0xff]  ;;  %v1180_v30 = vld [vmem:[#allocation8 + $0x168] sm:$0xff]  ;;  %v2694_v59 = vpack.c.bf16 %v1206_v54, %v1204_v53  ;;  %v1242_v53 = vld [vmem:[#allocation8 + $0x358] sm:$0xff] }
 0x1fd   :  { %v2668_v32 = vpack.c.bf16 %v1177_v29, %v1175_v28  ;;  %v2670_v33 = vpack.c.bf16 %v1182_v31, %v1180_v30  ;;  %v1429_v28 = vld [vmem:[#allocation11 + $0x40] sm:$0xff]  ;;  %v1430_v29 = vld [vmem:[#allocation11 + $0x48] sm:$0xff]  ;;  %v1447_v30 = vld [vmem:[#allocation11 + $0xd0] sm:$0xff] }
 0x1fe   :  { %908 = vmatmul.mubr.f32.vlgmr.msra.gmra.mrb[0].mxu0 %v3631_v36  ;;  %v1448_v31 = vld [vmem:[#allocation11 + $0xd8] sm:$0xff] }
 0x1ff   :  { %1121 = vmatmul.mubr.f32.vlgmr.msra.gmra.mrb[0].mxu1 %v3631_v36  ;;  %2629 = vmatpush1.bf16.msra.mxu0 %v2628_v35  ;;  %v2642_v36 = vpack.c.bf16 %v1154_v52, %v1152_v51  ;;  %v1181_v35 = vld [vmem:[#allocation8 + $0x170] sm:$0xff]  ;;  %v2682_v51 = vpack.c.bf16 %v1194_v50, %v1192_v49  ;;  %v1191_v52 = vld [vmem:[#allocation8 + $0x1c0] sm:$0xff] }
 0x200   :  { %2631 = vmatprep.subr.bf16.mxu0 %v2630_v37  ;;  %v1184_v37 = vld [vmem:[#allocation8 + $0x188] sm:$0xff]  ;;  %v2672_v38 = vpack.c.bf16 %v1181_v35, %v1179_v34  ;;  %v1431_v34 = vld [vmem:[#allocation11 + $0x50] sm:$0xff]  ;;  %v1432_v35 = vld [vmem:[#allocation11 + $0x58] sm:$0xff] }
 0x201   :  { %v2674_v39 = vpack.c.bf16 %v1186_v11, %v1184_v37  ;;  %v2776_v37 = vpack.c.bf16 %v1432_v35, %v1431_v34  ;;  %v650_v11 = vsub.s32 0, %v3603_v61 }
 0x203   :  { %2633 = vmatpush1.bf16.msra.mxu0 %v2632_v41  ;;  %v1185_v41 = vld [vmem:[#allocation8 + $0x190] sm:$0xff] }
 0x204   :  { %2635 = vmatprep.subr.bf16.mxu0 %v2634_v42  ;;  %v1188_v42 = vld [vmem:[#allocation8 + $0x1a8] sm:$0xff]  ;;  %v2676_v44 = vpack.c.bf16 %v1185_v41, %v1183_v40  ;;  %v662_v40 = vsub.s32 3, %v3603_v61 }
 0x205   :  { %v2678_v45 = vpack.c.bf16 %v1190_v43, %v1188_v42 }
 0x207   :  { %2637 = vmatpush1.bf16.msra.mxu0 %v2636_v47  ;;  %v1189_v47 = vld [vmem:[#allocation8 + $0x1b0] sm:$0xff] }
 0x208   :  { %2639 = vmatprep.subr.bf16.mxu0 %v2638_v48  ;;  %v2680_v48 = vpack.c.bf16 %v1189_v47, %v1187_v46 }
 0x20b   :  { %2641 = vmatpush1.bf16.msra.mxu0 %v2640_v25  ;;  %v1193_v25 = vld [vmem:[#allocation8 + $0x1d0] sm:$0xff] }
 0x20c   :  { %2643 = vmatprep.subr.bf16.mxu0 %v2642_v36  ;;  %v2684_v36 = vpack.c.bf16 %v1193_v25, %v1191_v52  ;;  %v1199_v52 = vld [vmem:[#allocation8 + $0x200] sm:$0xff]  ;;  %v1201_v25 = vld [vmem:[#allocation8 + $0x210] sm:$0xff] }
 0x20f   :  { %2645 = vmatpush1.bf16.msra.mxu0 %v2644_v57  ;;  %v1197_v57 = vld [vmem:[#allocation8 + $0x1f0] sm:$0xff] }
 0x210   :  { %2647 = vmatprep.subr.bf16.mxu0 %v2646_v58  ;;  %v2688_v58 = vpack.c.bf16 %v1197_v57, %v1195_v56  ;;  %v2692_v57 = vpack.c.bf16 %v1201_v25, %v1199_v52  ;;  %v1235_v52 = vld [vmem:[#allocation8 + $0x320] sm:$0xff]  ;;  %v1237_v25 = vld [vmem:[#allocation8 + $0x330] sm:$0xff] }
 0x211   :  { %v2728_v54 = vpack.c.bf16 %v1237_v25, %v1235_v52 }
 0x213   :  { %2649 = vmatpush1.bf16.msra.mxu0 %v2648_v63  ;;  %v1438_v63 = vld [vmem:[#allocation11 + $0x88] sm:$0xff] }
 0x214   :  { %2651 = vmatprep.subr.bf16.mxu0 %v2650_v0  ;;  %v1421_v0 = vld [vmem:[#allocation11] sm:$0xff]  ;;  %v2754_v1 = vpack.c.bf16 %v1438_v63, %v1437_v62 }
 0x215   :  { %v1208_v63 = vld [vmem:[#allocation8 + $0x248] sm:$0xff] }
 0x216   :  { %2755 = vmatprep.subr.bf16.mxu1 %v2754_v1 }
 0x217   :  { %2653 = vmatpush1.bf16.msra.mxu0 %v2652_v5  ;;  %v2756_v5 = vpack.c.bf16 %v1422_v2, %v1421_v0  ;;  %v1210_v0 = vld [vmem:[#allocation8 + $0x258] sm:$0xff] }
 0x218   :  { %2655 = vmatprep.subr.bf16.mxu0 %v2654_v6  ;;  %v2758_v6 = vpack.c.bf16 %v1440_v4, %v1439_v3  ;;  %v2698_v2 = vpack.c.bf16 %v1210_v0, %v1208_v63  ;;  %v1207_v3 = vld [vmem:[#allocation8 + $0x240] sm:$0xff]  ;;  %v1209_v4 = vld [vmem:[#allocation8 + $0x250] sm:$0xff]  ;;  %v1248_v0 = vld [vmem:[#allocation8 + $0x388] sm:$0xff] }
 0x219   :  { %2757 = vmatpush3.bf16.msra.mxu1 %v2756_v5  ;;  %v1212_v5 = vld [vmem:[#allocation8 + $0x268] sm:$0xff]  ;;  %v1245_v63 = vld [vmem:[#allocation8 + $0x370] sm:$0xff] }
 0x21a   :  { %2759 = vmatprep.subr.bf16.mxu1 %v2758_v6  ;;  %v1214_v6 = vld [vmem:[#allocation8 + $0x278] sm:$0xff] }
 0x21b   :  { %2657 = vmatpush1.bf16.msra.mxu0 %v2656_v12  ;;  %v2760_v12 = vpack.c.bf16 %v1424_v8, %v1423_v7  ;;  %v2700_v7 = vpack.c.bf16 %v1209_v4, %v1207_v3  ;;  %v2702_v8 = vpack.c.bf16 %v1214_v6, %v1212_v5  ;;  %v1247_v4 = vld [vmem:[#allocation8 + $0x380] sm:$0xff]  ;;  %v1249_v5 = vld [vmem:[#allocation8 + $0x390] sm:$0xff]  ;;  %v1252_v6 = vld [vmem:[#allocation8 + $0x3a8] sm:$0xff] }
 0x21c   :  { %2659 = vmatprep.subr.bf16.mxu0 %v2658_v13  ;;  %v2762_v13 = vpack.c.bf16 %v1442_v10, %v1441_v9  ;;  %v1211_v9 = vld [vmem:[#allocation8 + $0x260] sm:$0xff]  ;;  %v1213_v10 = vld [vmem:[#allocation8 + $0x270] sm:$0xff] }
 0x21d   :  { %2761 = vmatpush3.bf16.msra.mxu1 %v2760_v12  ;;  %v1216_v12 = vld [vmem:[#allocation8 + $0x288] sm:$0xff] }
 0x21e   :  { %2763 = vmatprep.subr.bf16.mxu1 %v2762_v13  ;;  %v1218_v13 = vld [vmem:[#allocation8 + $0x298] sm:$0xff] }
 0x21f   :  { %2661 = vmatpush1.bf16.msra.mxu0 %v2660_v18  ;;  %v2764_v18 = vpack.c.bf16 %v1426_v15, %v1425_v14  ;;  %v2704_v14 = vpack.c.bf16 %v1213_v10, %v1211_v9  ;;  %v2706_v15 = vpack.c.bf16 %v1218_v13, %v1216_v12  ;;  %v658_v9 = vsub.s32 2, %v3603_v61  ;;  %v1251_v12 = vld [vmem:[#allocation8 + $0x3a0] sm:$0xff]  ;;  %v1253_v13 = vld [vmem:[#allocation8 + $0x3b0] sm:$0xff] }
 0x220   :  { %2663 = vmatprep.subr.bf16.mxu0 %v2662_v19  ;;  %v2766_v19 = vpack.c.bf16 %v1444_v17, %v1443_v16  ;;  %v1215_v16 = vld [vmem:[#allocation8 + $0x280] sm:$0xff]  ;;  %v1217_v17 = vld [vmem:[#allocation8 + $0x290] sm:$0xff] }
 0x221   :  { %2765 = vmatpush3.bf16.msra.mxu1 %v2764_v18  ;;  %v1220_v18 = vld [vmem:[#allocation8 + $0x2a8] sm:$0xff] }
 0x222   :  { %2767 = vmatprep.subr.bf16.mxu1 %v2766_v19  ;;  %v1222_v19 = vld [vmem:[#allocation8 + $0x2b8] sm:$0xff] }
 0x223   :  { %2665 = vmatpush1.bf16.msra.mxu0 %v2664_v26  ;;  %v2768_v26 = vpack.c.bf16 %v1428_v21, %v1427_v20  ;;  %v2708_v20 = vpack.c.bf16 %v1217_v17, %v1215_v16  ;;  %v2710_v21 = vpack.c.bf16 %v1222_v19, %v1220_v18  ;;  %v2744_v16 = vpack.c.bf16 %v1253_v13, %v1251_v12  ;;  %v1255_v19 = vld [vmem:[#allocation8 + $0x3c0] sm:$0xff]  ;;  %v1546_v12 = vld [vmem:[%s3773_s8 + $0x70] sm:$0xff]  ;;  %v1547_v13 = vld [vmem:[%s3773_s8 + $0x78] sm:$0xff] }
 0x224   :  { %2667 = vmatprep.subr.bf16.mxu0 %v2666_v27  ;;  %v2770_v27 = vpack.c.bf16 %v1446_v24, %v1445_v23  ;;  %v1219_v23 = vld [vmem:[#allocation8 + $0x2a0] sm:$0xff]  ;;  %v1221_v24 = vld [vmem:[#allocation8 + $0x2b0] sm:$0xff] }
 0x225   :  { %2769 = vmatpush3.bf16.msra.mxu1 %v2768_v26  ;;  %v1224_v26 = vld [vmem:[#allocation8 + $0x2c8] sm:$0xff] }
 0x226   :  { %2771 = vmatprep.subr.bf16.mxu1 %v2770_v27  ;;  %v1226_v27 = vld [vmem:[#allocation8 + $0x2d8] sm:$0xff] }
 0x227   :  { %2669 = vmatpush1.bf16.msra.mxu0 %v2668_v32  ;;  %v2772_v32 = vpack.c.bf16 %v1430_v29, %v1429_v28  ;;  %v2712_v28 = vpack.c.bf16 %v1221_v24, %v1219_v23  ;;  %v2714_v29 = vpack.c.bf16 %v1226_v27, %v1224_v26  ;;  %v1262_v23 = vld [vmem:[#allocation8 + $0x3f8] sm:$0xff] }
 0x228   :  { %2671 = vmatprep.subr.bf16.mxu0 %v2670_v33  ;;  %v2774_v33 = vpack.c.bf16 %v1448_v31, %v1447_v30  ;;  %v1223_v30 = vld [vmem:[#allocation8 + $0x2c0] sm:$0xff]  ;;  %v1225_v31 = vld [vmem:[#allocation8 + $0x2d0] sm:$0xff] }
 0x229   :  { %2773 = vmatpush3.bf16.msra.mxu1 %v2772_v32  ;;  %v1228_v32 = vld [vmem:[#allocation8 + $0x2e8] sm:$0xff]  ;;  %v2716_v34 = vpack.c.bf16 %v1225_v31, %v1223_v30 }
 0x22a   :  { %2775 = vmatprep.subr.bf16.mxu1 %v2774_v33  ;;  %v1230_v33 = vld [vmem:[#allocation8 + $0x2f8] sm:$0xff] }
 0x22b   :  { %2673 = vmatpush1.bf16.msra.mxu0 %v2672_v38  ;;  %v3640_v38 = vld [vmem:[#allocation7] sm:$0xf]  ;;  %v2718_v35 = vpack.c.bf16 %v1230_v33, %v1228_v32  ;;  %v1449_v32 = vld [vmem:[#allocation11 + $0xe0] sm:$0xff]  ;;  %v1450_v33 = vld [vmem:[#allocation11 + $0xe8] sm:$0xff] }
 0x22c   :  { %2675 = vmatprep.subr.bf16.mxu0 %v2674_v39  ;;  %v654_v39 = vsub.s32 1, %v3603_v61  ;;  %v651_v41 = vrot.slane %v3640_v38, %v650_v11  ;;  %v663_v43 = vrot.slane %v3640_v38, %v662_v40  ;;  %v1229_v40 = vld [vmem:[#allocation8 + $0x2f0] sm:$0xff]  ;;  %v659_v17 = vrot.slane %v3640_v38, %v658_v9  ;;  %v1545_v9 = vld [vmem:[%s3773_s8 + $0x68] sm:$0xff] }
 0x22d   :  { %2777 = vmatpush3.bf16.msra.mxu1 %v2776_v37  ;;  %v1227_v37 = vld [vmem:[#allocation8 + $0x2e0] sm:$0xff]  ;;  %v1534_v61 = vld [vmem:[%s3773_s8 + $0x10] sm:$0xff] }
 0x22e   :  { %v655_v42 = vrot.slane %v3640_v38, %v654_v39 }
 0x22f   :  { %2677 = vmatpush1.bf16.msra.mxu0 %v2676_v44 }
 0x230   :  { %2679 = vmatprep.subr.bf16.mxu0 %v2678_v45 }
 0x233   :  { %2681 = vmatpush1.bf16.msra.mxu0 %v2680_v48 }
 0x234   :  { %2683 = vmatprep.subr.bf16.mxu0 %v2682_v51 }
 0x237   :  { %2685 = vmatpush1.bf16.msra.mxu0 %v2684_v36 }
 0x238   :  { %2687 = vmatprep.subr.bf16.mxu0 %v2686_v55 }
 0x23b   :  { %2689 = vmatpush1.bf16.msra.mxu0 %v2688_v58 }
 0x23c   :  { %2691 = vmatprep.subr.bf16.mxu0 %v2690_v60  ;;  %v1205_v60 = vld [vmem:[#allocation8 + $0x230] sm:$0xff] }
 0x23d   :  { %v2696_v1 = vpack.c.bf16 %v1205_v60, %v1203_v22 }
 0x2d1   :  { %v909_v44 = vpop.f32.mrb[0].mxu0 }
 0x2d2   :  { %v2834_v45 = vadd.f32 %v909_v44, %v651_v41  ;;  %v3651_v46 = vpop.f32.mrb[0].mxu1  ;;  %v911_v47 = vpop.f32.mrb[1].mxu0  ;;  %v1232_v41 = vld [vmem:[#allocation8 + $0x308] sm:$0xff] }
 0x2d3   :  { %v2835_v48 = vadd.f32 %v911_v47, %v655_v42  ;;  %v1124_v49 = vpop.f32.mrb[1].mxu1  ;;  %v1234_v42 = vld [vmem:[#allocation8 + $0x318] sm:$0xff]  ;;  %v1233_v47 = vld [vmem:[#allocation8 + $0x310] sm:$0xff]  ;;  %v2836_v26 = vadd.f32 %v3651_v46, %v659_v17  ;;  %v2073_v17 = vld [vmem:[#allocation13] ss:$0 sm:$0xff] }
 0x2d4   :  { %v1127_v50 = vmul.f32 0.2, %v2834_v45  ;;  %v2837_v51 = vadd.f32 %v1124_v49, %v663_v43  ;;  %v2720_v43 = vpack.c.bf16 %v1229_v40, %v1227_v37  ;;  %v2722_v44 = vpack.c.bf16 %v1234_v42, %v1232_v41  ;;  %v1238_v49 = vld [vmem:[#allocation8 + $0x338] sm:$0xff]  ;;  %v1434_v37 = vld [vmem:[#allocation11 + $0x68] sm:$0xff] }
 0x2d5   :  { %v1128_v36 = vmul.f32 0.2, %v2835_v48  ;;  %v1129_v31 = vmul.f32 0.2, %v2836_v26  ;;  %v1451_v46 = vld [vmem:[#allocation11 + $0xf0] sm:$0xff]  ;;  %v1452_v41 = vld [vmem:[#allocation11 + $0xf8] sm:$0xff] }
 0x2d6   :  { %v1130_v55 = vmul.f32 0.2, %v2837_v51  ;;  %v1131_v58 = vmax.f32 %v2834_v45, %v1127_v50  ;;  %v1231_v45 = vld [vmem:[#allocation8 + $0x300] sm:$0xff]  ;;  %v2782_v42 = vpack.c.bf16 %v1452_v41, %v1451_v46 }
 0x2d7   :  { %v1132_v56 = vmax.f32 %v2835_v48, %v1128_v36  ;;  %v1236_v48 = vld [vmem:[#allocation8 + $0x328] sm:$0xff]  ;;  %v2724_v50 = vpack.c.bf16 %v1233_v47, %v1231_v45  ;;  %v1133_v38 = vmax.f32 %v2836_v26, %v1129_v31  ;;  %v3295_v47 = vmov 0.0|0.0   ;;  %v1631_v26 = vld [vmem:[#allocation2] sm:$0x3]  ;;  %v1630_v31 = vld [vmem:[#allocation16 + $0x18] sm:$0xff] }
 0x2d8   :  { %v1134_v62 = vmax.f32 %v2837_v51, %v1130_v55  ;;  %v2726_v51 = vpack.c.bf16 %v1238_v49, %v1236_v48  ;;  %v1240_v36 = vld [vmem:[#allocation8 + $0x348] sm:$0xff]  ;;  %v1263_v48 = vld [vmem:[#allocation10] sm:$0x3] }
 0x2d9   :  { %1339 = vmatprep.mubr.f32.mxu0 %v1132_v56  ;;  %v2730_v55 = vpack.c.bf16 %v1242_v53, %v1240_v36  ;;  %v1239_v56 = vld [vmem:[#allocation8 + $0x340] sm:$0xff]  ;;  %v1268_v49 = vrot.slane %v1263_v48, %v650_v11 }
 0x2da   :  { %1340 = vmatmul.mubr.f32.vlgmr.msra.gmra.mrb[2].mxu0 %v1131_v58  ;;  %v1244_v58 = vld [vmem:[#allocation8 + $0x368] sm:$0xff] }
 0x2db   :  { %2693 = vmatpush1.bf16.msra.mxu0 %v2692_v57  ;;  %1410 = vmatprep.mubr.f32.mxu0 %v1134_v62  ;;  %v1241_v57 = vld [vmem:[#allocation8 + $0x350] sm:$0xff]  ;;  %v1243_v62 = vld [vmem:[#allocation8 + $0x360] sm:$0xff] }
 0x2dc   :  { %2695 = vmatprep.subr.bf16.mxu0 %v2694_v59  ;;  %v1246_v59 = vld [vmem:[#allocation8 + $0x378] sm:$0xff]  ;;  %v2732_v22 = vpack.c.bf16 %v1241_v57, %v1239_v56 }
 0x2dd   :  { %v2734_v60 = vpack.c.bf16 %v1246_v59, %v1244_v58 }
 0x2df   :  { %2697 = vmatpush1.bf16.msra.mxu0 %v2696_v1  ;;  %v1250_v1 = vld [vmem:[#allocation8 + $0x398] sm:$0xff] }
 0x2e0   :  { %2699 = vmatprep.subr.bf16.mxu0 %v2698_v2  ;;  %v2736_v2 = vpack.c.bf16 %v1245_v63, %v1243_v62  ;;  %v2738_v3 = vpack.c.bf16 %v1250_v1, %v1248_v0  ;;  %v1538_v63 = vld [vmem:[%s3773_s8 + $0x30] sm:$0xff]  ;;  %v1539_v0 = vld [vmem:[%s3773_s8 + $0x38] sm:$0xff] }
 0x2e1   :  { %v2796_v1 = vpack.c.bf16 %v1539_v0, %v1538_v63  ;;  %v1963_v0 = vld [vmem:[%s3782_s17] sm:$0xff] }
 0x2e3   :  { %2701 = vmatpush1.bf16.msra.mxu0 %v2700_v7  ;;  %v1254_v7 = vld [vmem:[#allocation8 + $0x3b8] sm:$0xff] }
 0x2e4   :  { %2703 = vmatprep.subr.bf16.mxu0 %v2702_v8  ;;  %v2740_v8 = vpack.c.bf16 %v1249_v5, %v1247_v4  ;;  %v2742_v10 = vpack.c.bf16 %v1254_v7, %v1252_v6  ;;  %v1542_v5 = vld [vmem:[%s3773_s8 + $0x50] sm:$0xff]  ;;  %v1543_v6 = vld [vmem:[%s3773_s8 + $0x58] sm:$0xff] }
 0x2e5   :  { %v2802_v7 = vpack.c.bf16 %v1543_v6, %v1542_v5  ;;  %v2080_v6 = vld [vmem:[#allocation25] ss:$0 sm:$0xff] }
 0x2e7   :  { %2705 = vmatpush1.bf16.msra.mxu0 %v2704_v14  ;;  %v1256_v14 = vld [vmem:[#allocation8 + $0x3c8] sm:$0xff] }
 0x2e8   :  { %2707 = vmatprep.subr.bf16.mxu0 %v2706_v15  ;;  %v1258_v15 = vld [vmem:[#allocation8 + $0x3d8] sm:$0xff] }
 0x2e9   :  { %v2746_v18 = vpack.c.bf16 %v1258_v15, %v1256_v14  ;;  %v2808_v14 = vpack.c.bf16 %v1547_v13, %v1546_v12  ;;  %v3297_v15 = vmov 0.0   ;;  %v2082_v13 = vld [vmem:[#allocation26] ss:$0 sm:$0xff] }
 0x2eb   :  { %2709 = vmatpush1.bf16.msra.mxu0 %v2708_v20  ;;  %v1257_v20 = vld [vmem:[#allocation8 + $0x3d0] sm:$0xff] }
 0x2ec   :  { %2711 = vmatprep.subr.bf16.mxu0 %v2710_v21  ;;  %v1260_v21 = vld [vmem:[#allocation8 + $0x3e8] sm:$0xff]  ;;  %v2748_v24 = vpack.c.bf16 %v1257_v20, %v1255_v19 }
 0x2ed   :  { %v2750_v27 = vpack.c.bf16 %v1262_v23, %v1260_v21 }
 0x2ef   :  { %2713 = vmatpush1.bf16.msra.mxu0 %v2712_v28  ;;  %v1259_v28 = vld [vmem:[#allocation8 + $0x3e0] sm:$0xff] }
 0x2f0   :  { %2715 = vmatprep.subr.bf16.mxu0 %v2714_v29  ;;  %v1261_v29 = vld [vmem:[#allocation8 + $0x3f0] sm:$0xff] }
 0x2f1   :  { %v2752_v30 = vpack.c.bf16 %v1261_v29, %v1259_v28  ;;  %v1628_v28 = vld [vmem:[#allocation16 + $0x8] sm:$0xff] }
 0x2f3   :  { %2717 = vmatpush1.bf16.msra.mxu0 %v2716_v34  ;;  %v2778_v34 = vpack.c.bf16 %v1450_v33, %v1449_v32  ;;  %v2074_v32 = vld [vmem:[#allocation14] ss:$0 sm:$0xff] }
 0x2f4   :  { %2719 = vmatprep.subr.bf16.mxu0 %v2718_v35  ;;  %v1433_v35 = vld [vmem:[#allocation11 + $0x60] sm:$0xff] }
 0x2f5   :  { %v2780_v40 = vpack.c.bf16 %v1434_v37, %v1433_v35  ;;  %2779 = vmatprep.subr.bf16.mxu1 %v2778_v34 }
 0x2f7   :  { %2721 = vmatpush1.bf16.msra.mxu0 %v2720_v43  ;;  %2781 = vmatpush3.bf16.msra.mxu1 %v2780_v40  ;;  %v1435_v43 = vld [vmem:[#allocation11 + $0x70] sm:$0xff] }
 0x2f8   :  { %2723 = vmatprep.subr.bf16.mxu0 %v2722_v44  ;;  %v1436_v44 = vld [vmem:[#allocation11 + $0x78] sm:$0xff]  ;;  %2783 = vmatprep.subr.bf16.mxu1 %v2782_v42  ;;  %v1791_v42 = vld [vmem:[#allocation20] sm:$0xff] }
 0x2f9   :  { %v2784_v45 = vpack.c.bf16 %v1436_v44, %v1435_v43  ;;  %v1792_v43 = vld [vmem:[#allocation20 + $0x8] sm:$0xff] }
 0x2fa   :  { %v2817_v44 = vpack.c.bf16 %v1792_v43, %v1791_v42 }
 0x2fb   :  { %2725 = vmatpush1.bf16.msra.mxu0 %v2724_v50  ;;  %2785 = vmatpush3.bf16.msra.mxu1 %v2784_v45  ;;  %v1272_v50 = vrot.slane %v1263_v48, %v654_v39  ;;  %v1535_v39 = vld [vmem:[%s3773_s8 + $0x18] sm:$0xff]  ;;  %v1793_v45 = vld [vmem:[#allocation20 + $0x10] sm:$0xff]  ;;  %v1794_v48 = vld [vmem:[#allocation20 + $0x18] sm:$0xff] }
 0x2fc   :  { %2727 = vmatprep.subr.bf16.mxu0 %v2726_v51  ;;  %2786 = vmatprep.subr.bf16.mxu1 %v3295_v47  ;;  %v2790_v59 = vpack.c.bf16 %v1535_v39, %v1534_v61  ;;  %v2078_v39 = vld [vmem:[#allocation22] ss:$0 sm:$0xff] }
 0x2ff   :  { %2729 = vmatpush1.bf16.msra.mxu0 %v2728_v54  ;;  %v1532_v54 = vld [vmem:[%s3773_s8] sm:$0xff] }
 0x300   :  { %2731 = vmatprep.subr.bf16.mxu0 %v2730_v55  ;;  %v1533_v55 = vld [vmem:[%s3773_s8 + $0x8] sm:$0xff] }
 0x301   :  { %v2787_v58 = vpack.c.bf16 %v1533_v55, %v1532_v54  ;;  %v1877_v55 = vld [vmem:[#allocation23] sm:$0xff] }
 0x303   :  { %2733 = vmatpush1.bf16.msra.mxu0 %v2732_v22  ;;  %v1536_v22 = vld [vmem:[%s3773_s8 + $0x20] sm:$0xff] }
 0x304   :  { %2735 = vmatprep.subr.bf16.mxu0 %v2734_v60  ;;  %v1537_v60 = vld [vmem:[%s3773_s8 + $0x28] sm:$0xff] }
 0x305   :  { %v2793_v62 = vpack.c.bf16 %v1537_v60, %v1536_v22 }
 0x307   :  { %2737 = vmatpush1.bf16.msra.mxu0 %v2736_v2  ;;  %v1540_v2 = vld [vmem:[%s3773_s8 + $0x40] sm:$0xff] }
 0x308   :  { %2739 = vmatprep.subr.bf16.mxu0 %v2738_v3  ;;  %v1541_v3 = vld [vmem:[%s3773_s8 + $0x48] sm:$0xff] }
 0x309   :  { %v2799_v4 = vpack.c.bf16 %v1541_v3, %v1540_v2  ;;  %v1965_v3 = vld [vmem:[%s3782_s17 + $0x10] sm:$0xff] }
 0x30b   :  { %2741 = vmatpush1.bf16.msra.mxu0 %v2740_v8  ;;  %v1544_v8 = vld [vmem:[%s3773_s8 + $0x60] sm:$0xff] }
 0x30c   :  { %2743 = vmatprep.subr.bf16.mxu0 %v2742_v10  ;;  %v2805_v10 = vpack.c.bf16 %v1545_v9, %v1544_v8 }
 0x30f   :  { %2745 = vmatpush1.bf16.msra.mxu0 %v2744_v16 }
 0x310   :  { %2747 = vmatprep.subr.bf16.mxu0 %v2746_v18 }
 0x313   :  { %2749 = vmatpush1.bf16.msra.mxu0 %v2748_v24  ;;  %v1632_v24 = vld [vmem:[#allocation17] sm:$0xff] }
 0x314   :  { %2751 = vmatprep.subr.bf16.mxu0 %v2750_v27  ;;  %v1627_v27 = vld [vmem:[#allocation16] sm:$0xff] }
 0x315   :  { %v2811_v29 = vpack.c.bf16 %v1628_v28, %v1627_v27 }
 0x317   :  { %2753 = vmatpush1.bf16.msra.mxu0 %v2752_v30  ;;  %v1629_v30 = vld [vmem:[#allocation16 + $0x10] sm:$0xff] }
 0x31a   :  { %1411 = vmatmul.mubr.f32.vlgmr.msra.gmra.mrb[2].mxu0 %v1133_v38  ;;  %v2814_v38 = vpack.c.bf16 %v1630_v31, %v1629_v30 }
 0x3ed   :  { %v1412_v51 = vpop.f32.mrb[2].mxu0 }
 0x3ee   :  { %v2838_v52 = vadd.f32 %v1412_v51, %v1268_v49  ;;  %v1414_v25 = vpop.f32.mrb[3].mxu0  ;;  %v2820_v49 = vpack.c.bf16 %v1794_v48, %v1793_v45  ;;  %v2077_v51 = vld [vmem:[#allocation19] ss:$0 sm:$0xff] }
 0x3ef   :  { %v2839_v36 = vadd.f32 %v1414_v25, %v1272_v50 }
 0x3f0   :  { %v1417_v53 = vmul.f32 0.2, %v2838_v52 }
 0x3f1   :  { %v1418_v56 = vmul.f32 0.2, %v2839_v36 }
 0x3f2   :  { %v1419_v11 = vmax.f32 %v2838_v52, %v1417_v53 }
 0x3f3   :  { %v1420_v57 = vmax.f32 %v2839_v36, %v1418_v56  ;;  %v1878_v56 = vld [vmem:[#allocation23 + $0x8] sm:$0xff] }
 0x3f5   :  { %1524 = vmatprep.mubr.f32.mxu1 %v1420_v57  ;;  %v2823_v57 = vpack.c.bf16 %v1878_v56, %v1877_v55 }
 0x3f6   :  { %1525 = vmatmul.mubr.f32.vlgmr.msra.gmra.mrb[2].mxu1 %v1419_v11  ;;  %v1880_v11 = vld [vmem:[#allocation23 + $0x18] sm:$0xff] }
 0x3f7   :  { %2788 = vmatpush3.bf16.msra.mxu1 %v2787_v58  ;;  %2190 = vmatprep.mubr.msk.f32.mxu1 %vm3296_vm0, %v3297_v15  ;;  %v1879_v58 = vld [vmem:[#allocation23 + $0x10] sm:$0xff] }
 0x3f8   :  { %2789 = vmatprep.subr.bf16.mxu1 %v3295_v47  ;;  %v2826_v61 = vpack.c.bf16 %v1880_v11, %v1879_v58 }
 0x3fb   :  { %2791 = vmatpush3.bf16.msra.mxu1 %v2790_v59 }
 0x3fc   :  { %2792 = vmatprep.subr.bf16.mxu1 %v3295_v47 }
 0x3ff   :  { %2794 = vmatpush3.bf16.msra.mxu1 %v2793_v62 }
 0x400   :  { %2795 = vmatprep.subr.bf16.mxu1 %v3295_v47 }
 0x403   :  { %2797 = vmatpush3.bf16.msra.mxu1 %v2796_v1  ;;  %v1964_v1 = vld [vmem:[%s3782_s17 + $0x8] sm:$0xff] }
 0x404   :  { %2798 = vmatprep.subr.bf16.mxu1 %v3295_v47  ;;  %v2829_v2 = vpack.c.bf16 %v1964_v1, %v1963_v0 }
 0x407   :  { %2800 = vmatpush3.bf16.msra.mxu1 %v2799_v4  ;;  %v1966_v4 = vld [vmem:[%s3782_s17 + $0x18] sm:$0xff]  ;;  %s3230_s17 = scalar_lea.vmem %s2056_s4, 32 }
 0x408   :  { %2801 = vmatprep.subr.bf16.mxu1 %v3295_v47  ;;  %v2832_v5 = vpack.c.bf16 %v1966_v4, %v1965_v3  ;;  %p3231_p2 = scmp.ne.s32.totalorder %s2056_s4, %s3230_s17  ;;  %p3236_p4 = scmp.lt.s32.totalorder %s3230_s17, %s3230_s17 }
 0x40a   :  { %p3237_p5 = por %p3236_p4, %p3235_p3 }
 0x40b   :  { %2803 = vmatpush3.bf16.msra.mxu1 %v2802_v7 }
 0x40c   :  { %2804 = vmatprep.subr.bf16.mxu1 %v3295_v47  ;;  %p3238_p6 = pnand %p3237_p5, %p3231_p2 }
 0x40f   :  { %2806 = vmatpush3.bf16.msra.mxu1 %v2805_v10 }
 0x410   :  { %2807 = vmatprep.subr.bf16.mxu1 %v3295_v47 }
 0x413   :  { %2809 = vmatpush3.bf16.msra.mxu1 %v2808_v14 }
 0x414   :  { %2193 = vmatprep.subr.mxu1 %v3297_v15 }
 0x4c9   :  { %v2116_v16 = vpop.f32.mrb[2].mxu1 }
 0x4ca   :  { %v2117_v18 = vpop.f32.mrb[3].mxu1 }
 0x4cb   :  { %v2118_v19 = vadd.f32 %v2117_v18, %v2116_v16 }
 0x4cd   :  { %v1527_v20 = vadd.f32 %v2118_v19, %v2073_v17 }
 0x4cf   :  { %v1530_v21 = vmul.f32 0.2, %v1527_v20 }
 0x4d1   :  { %v1531_v23 = vmax.f32 %v1527_v20, %v1530_v21 }
 0x4d3   :  { %2191 = vmatmul.mubr.f32.vlgmr.msra.gmra.mrb[4].mxu1 %v1531_v23 }
 0x4d4   :  { %2194 = vmatpush3.msra.mxu1 %v1632_v24  ;;  %2195 = vmatprep.mubr.msk.f32.mxu1 %vm3296_vm0, %v3297_v15 }
 0x4d5   :  { %2810 = vmatprep.subr.bf16.mxu1 %v3295_v47 }
 0x4d7   :  { %2196 = vmatmul.mubr.msk.f32.vlgmr.msra.gmra.mrb[6].mxu1 %vm1633_vm1, %v1631_v26 }
 0x4d8   :  { %2206 = vmatprep.mubr.msk.f32.mxu1 %vm3296_vm0, %v3297_v15  ;;  %2812 = vmatpush3.bf16.msra.mxu1 %v2811_v29 }
 0x4d9   :  { %2813 = vmatprep.subr.bf16.mxu1 %v3295_v47 }
 0x4dc   :  { %2815 = vmatpush3.bf16.msra.mxu1 %v2814_v38 }
 0x4dd   :  { %2816 = vmatprep.subr.bf16.mxu1 %v3295_v47 }
 0x5a6   :  { %v1621_v33 = vpop.f32.mrb[4].mxu1 }
 0x5a7   :  { %v1622_v34 = vadd.f32 %v2074_v32, %v1621_v33  ;;  %v2192_v35 = vpop.f32.mrb[5].mxu1 }
 0x5a9   :  { %v1625_v37 = vmul.f32 0.2, %v1622_v34 }
 0x5aa   :  { %v1703_v40 = vpop.f32.mrb[6].mxu1 }
 0x5ab   :  { %v1626_v46 = vmax.f32 %v1622_v34, %v1625_v37  ;;  %v2197_v41 = vpop.f32.mrb[7].mxu1 }
 0x5ad   :  { %2207 = vmatmul.mubr.msk.f32.vlgmr.msra.gmra.mrb[8].mxu1 %vm1707_vm2, %v1626_v46 }
 0x5ae   :  { %2217 = vmatprep.mubr.msk.f32.mxu1 %vm3296_vm0, %v3297_v15  ;;  %2818 = vmatpush3.bf16.msra.mxu1 %v2817_v44 }
 0x5af   :  { %2819 = vmatprep.subr.bf16.mxu1 %v3295_v47 }
 0x5b2   :  { %2821 = vmatpush3.bf16.msra.mxu1 %v2820_v49 }
 0x5b3   :  { %2822 = vmatprep.subr.bf16.mxu1 %v3295_v47 }
 0x680   :  { %v1777_v50 = vpop.f32.mrb[8].mxu1 }
 0x681   :  { %v1778_v52 = vadd.f32 %v1777_v50, %v1703_v40  ;;  %v2208_v25 = vpop.f32.mrb[9].mxu1 }
 0x683   :  { %v1788_v36 = vadd.f32 %v2077_v51, %v1778_v52 }
 0x685   :  { %v1789_v53 = vmul.f32 0.2, %v1788_v36 }
 0x687   :  { %v1790_v54 = vmax.f32 %v1788_v36, %v1789_v53 }
 0x689   :  { %2218 = vmatmul.mubr.msk.f32.vlgmr.msra.gmra.mrb[10].mxu1 %vm1707_vm2, %v1790_v54 }
 0x68a   :  { %2228 = vmatprep.mubr.msk.f32.mxu1 %vm3296_vm0, %v3297_v15  ;;  %2824 = vmatpush3.bf16.msra.mxu1 %v2823_v57 }
 0x68b   :  { %2825 = vmatprep.subr.bf16.mxu1 %v3295_v47 }
 0x68e   :  { %2827 = vmatpush3.bf16.msra.mxu1 %v2826_v61 }
 0x68f   :  { %2828 = vmatprep.subr.bf16.mxu1 %v3295_v47 }
 0x75c   :  { %v1871_v59 = vpop.f32.mrb[10].mxu1 }
 0x75d   :  { %v1872_v22 = vadd.f32 %v2078_v39, %v1871_v59  ;;  %v2219_v60 = vpop.f32.mrb[11].mxu1 }
 0x75f   :  { %v1875_v62 = vmul.f32 0.2, %v1872_v22 }
 0x761   :  { %v1876_v63 = vmax.f32 %v1872_v22, %v1875_v62 }
 0x763   :  { %2229 = vmatmul.mubr.msk.f32.vlgmr.msra.gmra.mrb[12].mxu1 %vm1707_vm2, %v1876_v63 }
 0x764   :  { %2239 = vmatprep.mubr.msk.f32.mxu1 %vm3296_vm0, %v3297_v15  ;;  %2830 = vmatpush3.bf16.msra.mxu1 %v2829_v2 }
 0x765   :  { %2831 = vmatprep.subr.bf16.mxu1 %v3295_v47 }
 0x768   :  { %2833 = vmatpush3.bf16.msra.mxu1 %v2832_v5 }
 0x836   :  { %v1957_v7 = vpop.f32.mrb[12].mxu1 }
 0x837   :  { %v1958_v8 = vadd.f32 %v2080_v6, %v1957_v7  ;;  %v2230_v9 = vpop.f32.mrb[13].mxu1 }
 0x839   :  { %v1961_v10 = vmul.f32 0.2, %v1958_v8 }
 0x83b   :  { %v1962_v12 = vmax.f32 %v1958_v8, %v1961_v10 }
 0x83d   :  { %2240 = vmatmul.mubr.msk.f32.vlgmr.msra.gmra.mrb[14].mxu1 %vm1707_vm2, %v1962_v12 }
 0x910   :  { %v2043_v47 = vpop.f32.mrb[14].mxu1 }
 0x911   :  { %v2044_v14 = vadd.f32 %v2082_v13, %v2043_v47  ;;  %v2241_v15 = vpop.f32.mrb[15].mxu1 }
 0x913   :  { %2048 = vst.msk [vmem:[#allocation28] sm:$0x3] %vm2047_vm3, %v2044_v14 }
 0x914   :  { %3241 = shalt.err (!%p3238_p6)
}
 0x915   :  { %s3799_s19 = sld [smem:[#allocation43_spill]] }
 0x91b   :  { %s3242_s13 = scalar_lea.hbm %s3799_s19, 32 }
 0x91c   :  { %p3243_p7 = scmp.ne.s32.totalorder %s3799_s19, %s3242_s13  ;;  %p3246_p8 = scmp.lt.u32.totalorder %s3242_s13, %s3799_s19 }
 0x91e   :  { %p3248_p9 = pnand %p3246_p8, %p3243_p7 }
 0x920   :  { %3251 = shalt.err (!%p3248_p9)
}
 0x921   :  { %2058 = dma.vmem_to_hbm [thread:$0]  %s2056_s4, 32, %s3799_s19, [#allocation4]  }
 0x922   :  { %3270 = dma.done.wait [#allocation4], 32  }
 0x923   :  { %3271 = vsyncadd [#allocation4], 4294967264 }
 0x924   :  { %2062 = vsyncpa [#allocation3], 1 }
 0x925   :  { %2063 = vsyncpa [#allocation6], 1 }
 0x926   :  { %2064 = vsyncpa [#allocation9], 1 }
 0x927   :  { %2065 = vsyncpa [#allocation12], 1 }
 0x928   :  { %2066 = vsyncpa [#allocation15], 1 }
 0x929   :  { %2067 = vsyncpa [#allocation18], 1 }
 0x92a   :  { %2068 = vsyncpa [#allocation21], 1 }
 0x92b   :  { %2069 = vsyncpa [#allocation24], 1 }
 0x92c   :  { %2070 = vsyncpa [#allocation27], 1 }
 0x92d   :  { %2071 = vsyncpa [#allocation4], 1 }

</bundles_post_ra>
